<compile_context>
chip_gen: v6e
topology: v6e:2x2x1
jax: 0.10.0
libtpu: 0.0.40
codegen_flags: <defaults>
</compile_context>

<pallas_src>
import functools

import jax
import jax.numpy as jnp
from jax.experimental import pallas as pl
from jax.experimental.pallas import tpu as pltpu


BLOCK = 128  # stk blocking used by megablocks topologies


# ---------------------------------------------------------------------------
# Kernels
# ---------------------------------------------------------------------------

def _gelu_tanh(h):
    # torch.nn.functional.gelu(..., approximate='tanh') with folded constants:
    # 0.5*h*(1 + tanh(h*(c1 + c2*h*h))), c1=sqrt(2/pi), c2=c1*0.044715.
    c1 = 0.7978845608028654
    c2 = c1 * 0.044715
    return 0.5 * h * (1.0 + jnp.tanh(h * (c1 + c2 * h * h)))


def _sparse_mlp_kernel_chunked(gte_ref, x_ref, w1t_ref, w2_ref, o_ref, acc_ref,
                               *, compute_dtype):
    # gte_ref : (num_groups,) int32 in SMEM (scalar prefetch; consumed by index_maps)
    # x_ref   : (G*BLOCK, hidden)       one group of same-expert row blocks (native x dtype)
    # w1t_ref : (1, hidden, ffn_chunk)  this group's expert ffn-chunk of w1.T (contiguous)
    # w2_ref  : (1, ffn_chunk, hidden)  this group's expert ffn-chunk of w2   (contiguous)
    # o_ref   : (G*BLOCK, hidden)
    # acc_ref : (G*BLOCK, hidden) f32 VMEM accumulator (resident across the ffn-chunk axis)
    del gte_ref
    k = pl.program_id(1)

    @pl.when(k == 0)
    def _():
        acc_ref[...] = jnp.zeros_like(acc_ref)

    xb = x_ref[...].astype(compute_dtype)  # in-kernel cast: no wrapper-side HBM round trip
    h = jnp.dot(xb, w1t_ref[0], preferred_element_type=jnp.float32)
    g = _gelu_tanh(h)
    acc_ref[...] += jnp.dot(g.astype(compute_dtype), w2_ref[0],
                            preferred_element_type=jnp.float32)

    @pl.when(k == pl.num_programs(1) - 1)
    def _():
        o_ref[...] = acc_ref[...].astype(o_ref.dtype)


def _sparse_mlp_kernel_single(gte_ref, x_ref, w1t_ref, w2_ref, o_ref, *, compute_dtype):
    # Single-ffn-chunk variant: no accumulator scratch, no tail copy.
    del gte_ref
    xb = x_ref[...].astype(compute_dtype)
    h = jnp.dot(xb, w1t_ref[0], preferred_element_type=jnp.float32)
    g = _gelu_tanh(h)
    o_ref[...] = jnp.dot(g.astype(compute_dtype), w2_ref[0],
                         preferred_element_type=jnp.float32).astype(o_ref.dtype)


# ---------------------------------------------------------------------------
# Sizing helpers (per-chip VMEM-aware)
# ---------------------------------------------------------------------------

def _vmem_capacity_bytes():
    try:
        info = pltpu.get_tpu_info()
        cap = getattr(info, "vmem_capacity_bytes", None)
        if cap:
            return int(cap)
    except Exception:
        pass
    return 64 * 2 ** 20  # conservative fallback (v7x per-TensorCore)


def _vmem_footprint(rows, hidden, chunk, x_bytes, w_bytes, o_bytes, num_chunks):
    tiles = (rows * hidden * x_bytes          # x tile
             + hidden * chunk * w_bytes       # w1t chunk
             + chunk * hidden * w_bytes       # w2 chunk
             + rows * hidden * o_bytes)       # out tile
    inter = 3 * rows * chunk * 4              # gelu intermediates (h, g, temp) in f32
    acc = rows * hidden * 4 if num_chunks > 1 else 0
    return 2 * tiles + acc + inter            # double-buffered tiles + residents


def choose_ffn_chunk(hidden_size, ffn_hidden_size, *, group_blocks=2,
                     x_dtype=jnp.float32, out_dtype=jnp.float32,
                     compute_dtype=jnp.bfloat16, max_chunk=2048):
    """Largest 128-multiple ffn chunk (<= max_chunk) that divides ffn and fits VMEM."""
    rows = group_blocks * BLOCK
    xb = jnp.dtype(x_dtype).itemsize
    wb = jnp.dtype(compute_dtype).itemsize
    ob = jnp.dtype(out_dtype).itemsize
    budget = _vmem_capacity_bytes() * 3 // 4
    cands = [c for c in range(128, min(ffn_hidden_size, max_chunk) + 1, 128)
             if ffn_hidden_size % c == 0]
    if not cands:
        return ffn_hidden_size
    best = cands[0]
    for c in cands:
        nchunks = ffn_hidden_size // c
        if _vmem_footprint(rows, hidden_size, c, xb, wb, ob, nchunks) <= budget:
            best = c
    return best


# ---------------------------------------------------------------------------
# Weight preparation (one-time, outside the forward path)
# ---------------------------------------------------------------------------

def prepare_sparse_mlp_weights(w1_flat, w2_flat, *, hidden_size, ffn_hidden_size,
                               ffn_chunk, compute_dtype=jnp.bfloat16):
    """Pre-tile SparseMLP weights into chunk-major, HBM-contiguous expert chunks.

    w1_flat: [num_experts*ffn, hidden]  (SparseMLP.w1 storage layout: per-expert w1.T)
    w2_flat: [num_experts*ffn, hidden]  (SparseMLP.w2 storage layout)
    Returns:
      w1t_tiled: [num_experts*num_chunks, hidden, ffn_chunk]  (== w1[e][:, chunk] per tile)
      w2_tiled:  [num_experts*num_chunks, ffn_chunk, hidden]
    both in compute_dtype, so no per-call transpose / cast / strided DMA in the forward.
    """
    assert w1_flat.shape[1] == hidden_size and w2_flat.shape[1] == hidden_size
    assert w1_flat.shape[0] == w2_flat.shape[0]
    assert w1_flat.shape[0] % ffn_hidden_size == 0
    assert ffn_hidden_size % ffn_chunk == 0
    num_experts = w1_flat.shape[0] // ffn_hidden_size
    num_chunks = ffn_hidden_size // ffn_chunk

    # w1_flat is [E, ffn, hidden] flattened; make (hidden, chunk) tiles contiguous.
    w1_4d = w1_flat.reshape(num_experts, num_chunks, ffn_chunk, hidden_size)
    w1t_tiled = jnp.transpose(w1_4d, (0, 1, 3, 2)).reshape(
        num_experts * num_chunks, hidden_size, ffn_chunk).astype(compute_dtype)
    # w2 chunks are already contiguous row slabs; just reshape + cast.
    w2_tiled = w2_flat.reshape(
        num_experts * num_chunks, ffn_chunk, hidden_size).astype(compute_dtype)
    return w1t_tiled, w2_tiled


# ---------------------------------------------------------------------------
# Forward
# ---------------------------------------------------------------------------

@functools.partial(
    jax.jit,
    static_argnames=("hidden_size", "ffn_hidden_size", "group_blocks", "compute_dtype"),
)
def sparse_mlp(x, w1t_tiled, w2_tiled, block_to_expert, *, hidden_size,
               ffn_hidden_size, group_blocks=1, compute_dtype=jnp.bfloat16):
    """Block-sparse expert MLP forward.

    x:               [num_blocks*BLOCK, hidden_size]
    w1t_tiled:       [num_experts*num_chunks, hidden_size, ffn_chunk]   (prepared)
    w2_tiled:        [num_experts*num_chunks, ffn_chunk, hidden_size]   (prepared)
    block_to_expert: [num_blocks] int32 -- topology: expert id of each 128-row block.
    group_blocks:    number of consecutive row blocks fused per grid step (M = G*128).
                     CONTRACT: every group of `group_blocks` consecutive blocks must map to a
                     single expert (the megablocks expert-grouped/padded topology provides
                     this); use group_blocks=1 for arbitrary topologies.
    """
    tokens, h = x.shape
    assert h == hidden_size
    assert tokens % BLOCK == 0
    num_blocks = tokens // BLOCK
    assert num_blocks % group_blocks == 0, "num_blocks must be divisible by group_blocks"
    num_groups = num_blocks // group_blocks
    gm = group_blocks * BLOCK

    ec, h1, ffn_chunk = w1t_tiled.shape
    assert h1 == hidden_size
    assert w2_tiled.shape == (ec, ffn_chunk, hidden_size)
    assert ffn_hidden_size % ffn_chunk == 0
    num_chunks = ffn_hidden_size // ffn_chunk
    assert ec % num_chunks == 0
    assert ffn_chunk % 128 == 0 and hidden_size % 128 == 0, "TPU (8,128) tiling constraint"
    assert block_to_expert.shape == (num_blocks,)

    out_dtype = x.dtype
    # Expert id per group (tiny SMEM-bound array). First block of each group is
    # representative under the homogeneous-group contract above.
    group_to_expert = block_to_expert.reshape(num_groups, group_blocks)[:, 0].astype(jnp.int32)

    # VMEM budget: double-buffered tiles + resident f32 accumulator + gelu intermediates,
    # ~25% headroom, capped below physical per-core VMEM (64 MiB on v7x, 128 MiB v5e/v6e).
    x_bytes = jnp.dtype(x.dtype).itemsize
    w_bytes = jnp.dtype(w1t_tiled.dtype).itemsize
    o_bytes = jnp.dtype(out_dtype).itemsize
    needed = _vmem_footprint(gm, hidden_size, ffn_chunk, x_bytes, w_bytes, o_bytes, num_chunks)
    cap = _vmem_capacity_bytes() * 7 // 8
    vmem_limit = int(min(max(needed * 5 // 4, 4 * 2 ** 20), cap))

    if num_chunks == 1:
        kernel = functools.partial(_sparse_mlp_kernel_single, compute_dtype=compute_dtype)
        scratch = []
    else:
        kernel = functools.partial(_sparse_mlp_kernel_chunked, compute_dtype=compute_dtype)
        scratch = [pltpu.VMEM((gm, hidden_size), jnp.float32)]

    grid_spec = pltpu.PrefetchScalarGridSpec(
        num_scalar_prefetch=1,
        grid=(num_groups, num_chunks),
        in_specs=[
            pl.BlockSpec((gm, hidden_size),
                         lambda g, k, gte: (g, 0)),
            pl.BlockSpec((1, hidden_size, ffn_chunk),
                         lambda g, k, gte: (gte[g] * num_chunks + k, 0, 0)),
            pl.BlockSpec((1, ffn_chunk, hidden_size),
                         lambda g, k, gte: (gte[g] * num_chunks + k, 0, 0)),
        ],
        out_specs=pl.BlockSpec((gm, hidden_size),
                               lambda g, k, gte: (g, 0)),
        scratch_shapes=scratch,
    )

    # TODO(synk): support variable-size / expert-boundary-straddling groups (megablox-style
    #             per-row masking) instead of requiring homogeneous fixed-size groups.
    # TODO(synk): fp8 (v7x) / int8 (v5e/v6e) weights with per-expert scales to further halve
    #             weight HBM traffic while memory-bound.
    # TODO(synk): on v7x, shard the group axis across the 2 TensorCores by expert group
    #             (core_map / CORE_PARALLEL) so both cores don't re-fetch the same chunks.
    return pl.pallas_call(
        kernel,
        out_shape=jax.ShapeDtypeStruct((tokens, hidden_size), out_dtype),
        grid_spec=grid_spec,
        compiler_params=pltpu.CompilerParams(
            dimension_semantics=("parallel", "arbitrary"),
            vmem_limit_bytes=vmem_limit,
        ),
    )(group_to_expert, x, w1t_tiled, w2_tiled)


# ---------------------------------------------------------------------------
# Pure-JAX reference + demo
# ---------------------------------------------------------------------------

def _reference(x, w1_flat, w2_flat, block_to_expert, ffn_hidden_size):
    # Pure-JAX f32 reference of the block-sparse forward.
    num_blocks = block_to_expert.shape[0]
    outs = []
    w1t = w1_flat.T
    for i in range(num_blocks):
        e = int(block_to_expert[i])
        xb = x[i * BLOCK:(i + 1) * BLOCK]
        w1e = w1t[:, e * ffn_hidden_size:(e + 1) * ffn_hidden_size]
        w2e = w2_flat[e * ffn_hidden_size:(e + 1) * ffn_hidden_size]
        h = xb @ w1e
        c = 0.7978845608028654
        g = 0.5 * h * (1.0 + jnp.tanh(c * (h + 0.044715 * h ** 3)))
        outs.append(g @ w2e)
    return jnp.concatenate(outs, axis=0)


if __name__ == "__main__":
    # Small-but-TPU-legal sizes (block dims (8,128)-divisible).
    num_experts = 2
    hidden_size = 128
    ffn_hidden_size = 256
    num_blocks = 4                      # 4 row-blocks of 128 tokens = 512 tokens total
    tokens = num_blocks * BLOCK

    key = jax.random.PRNGKey(0)
    k1, k2, k3 = jax.random.split(key, 3)

    # Expert weights in MLP.__init__ shapes: w1 [E, hidden, ffn], w2 [E, ffn, hidden];
    # SparseMLP flattens them as below.
    w1 = jax.random.normal(k1, (num_experts, hidden_size, ffn_hidden_size), jnp.float32) * 0.02
    w2 = jax.random.normal(k2, (num_experts, ffn_hidden_size, hidden_size), jnp.float32) * 0.02
    w1_flat = jnp.transpose(w1, (0, 2, 1)).reshape(-1, hidden_size)   # [E*ffn, hidden]
    w2_flat = w2.reshape(-1, hidden_size)                             # [E*ffn, hidden]

    x = jax.random.normal(k3, (tokens, hidden_size), jnp.float32)

    # Topology: expert id per 128-row block, sorted/grouped by expert (as megablocks produces),
    # so groups of 2 consecutive blocks are expert-homogeneous.
    block_to_expert = jnp.array([0, 0, 1, 1], dtype=jnp.int32)

    ref = _reference(x, w1_flat, w2_flat, block_to_expert, ffn_hidden_size)

    # --- Case 1: grouped-M (G=2 -> 256-row MXU passes) + chunked ffn reduction (2 chunks) ---
    w1t_a, w2_a = prepare_sparse_mlp_weights(
        w1_flat, w2_flat, hidden_size=hidden_size,
        ffn_hidden_size=ffn_hidden_size, ffn_chunk=128)
    out_a = sparse_mlp(
        x, w1t_a, w2_a, block_to_expert,
        hidden_size=hidden_size, ffn_hidden_size=ffn_hidden_size,
        group_blocks=2, compute_dtype=jnp.bfloat16)
    out_a = jax.block_until_ready(out_a)
    assert out_a.shape == (tokens, hidden_size)
    assert jnp.allclose(out_a.astype(jnp.float32), ref, atol=2e-2, rtol=2e-2), \
        "grouped/chunked path mismatch vs reference"

    # --- Case 2: ungrouped fallback (G=1) + VMEM-derived ffn_chunk (single chunk here) ------
    chunk_b = choose_ffn_chunk(hidden_size, ffn_hidden_size, group_blocks=1)
    w1t_b, w2_b = prepare_sparse_mlp_weights(
        w1_flat, w2_flat, hidden_size=hidden_size,
        ffn_hidden_size=ffn_hidden_size, ffn_chunk=chunk_b)
    out_b = sparse_mlp(
        x, w1t_b, w2_b, block_to_expert,
        hidden_size=hidden_size, ffn_hidden_size=ffn_hidden_size,
        group_blocks=1, compute_dtype=jnp.bfloat16)
    out_b = jax.block_until_ready(out_b)
    assert jnp.allclose(out_b.astype(jnp.float32), ref, atol=2e-2, rtol=2e-2), \
        "ungrouped path mismatch vs reference"

    print("KERNEL_OK")
</pallas_src>

<mosaic_0001>
module attributes {stable_mosaic.version = 11 : i64} {
  func.func @_sparse_mlp_kernel_chunked(%arg0: i32, %arg1: i32, %arg2: memref<2xi32, #tpu.memory_space<smem>>, %arg3: memref<256x128xf32, #tpu.memory_space<vmem>>, %arg4: memref<1x128x128xbf16, #tpu.memory_space<vmem>>, %arg5: memref<1x128x128xbf16, #tpu.memory_space<vmem>>, %arg6: memref<256x128xf32, #tpu.memory_space<vmem>>, %arg7: memref<256x128xf32, #tpu.memory_space<vmem>>) attributes {dimension_semantics = [#tpu.dimension_semantics<parallel>, #tpu.dimension_semantics<arbitrary>], iteration_bounds = array<i64: 2, 2>, scalar_prefetch = 1 : i64, scratch_operands = 1 : i64, tpu.core_type = #tpu.core_type<tc>, window_params = [{transform_indices = @transform_0, window_bounds = array<i64: 256, 128>}, {transform_indices = @transform_1, window_bounds = array<i64: 1, 128, 128>}, {transform_indices = @transform_2, window_bounds = array<i64: 1, 128, 128>}, {transform_indices = @transform_3, window_bounds = array<i64: 256, 128>}]} {
    %c0_i32 = arith.constant 0 : i32
    %0 = arith.cmpi eq, %arg1, %c0_i32 : i32
    %1 = arith.extui %0 : i1 to i32
    %c0_i32_0 = arith.constant 0 : i32
    %2 = arith.cmpi ne, %1, %c0_i32_0 : i32
    scf.if %2 {
      %cst_18 = arith.constant 0.000000e+00 : f32
      %30 = vector.broadcast %cst_18 : f32 to vector<256x128xf32>
      %c0_19 = arith.constant 0 : index
      %c0_20 = arith.constant 0 : index
      %31 = vector.load %arg7[%c0_19, %c0_20] : memref<256x128xf32, #tpu.memory_space<vmem>>, vector<256x128xf32>
      tpu.vector_store %arg7[%c0_19, %c0_20], %30 {strides = array<i32>} : memref<256x128xf32, #tpu.memory_space<vmem>>, vector<256x128xf32>,
    } else {
    }
    %c0 = arith.constant 0 : index
    %c0_1 = arith.constant 0 : index
    %3 = vector.load %arg3[%c0, %c0_1] : memref<256x128xf32, #tpu.memory_space<vmem>>, vector<256x128xf32>
    %4 = arith.truncf %3 : vector<256x128xf32> to vector<256x128xbf16>
    %c0_2 = arith.constant 0 : index
    %c0_3 = arith.constant 0 : index
    %c0_4 = arith.constant 0 : index
    %5 = vector.load %arg4[%c0_2, %c0_3, %c0_4] : memref<1x128x128xbf16, #tpu.memory_space<vmem>>, vector<1x128x128xbf16>
    %6 = vector.shape_cast %5 : vector<1x128x128xbf16> to vector<128x128xbf16>
    %cst = arith.constant dense<0.000000e+00> : vector<256x128xf32>
    %7 = tpu.matmul %4, %6, %cst {dimension_numbers = #tpu.dot_dimension_numbers<[1], [0], [0], [1], [0, 0, 1, 1], [], []>} : vector<256x128xbf16>, vector<128x128xbf16>, vector<256x128xf32> -> vector<256x128xf32>
    %cst_5 = arith.constant 5.000000e-01 : f32
    %8 = vector.broadcast %cst_5 : f32 to vector<256x128xf32>
    %9 = arith.mulf %8, %7 : vector<256x128xf32>
    %cst_6 = arith.constant 0.0356774069 : f32
    %10 = vector.broadcast %cst_6 : f32 to vector<256x128xf32>
    %11 = arith.mulf %10, %7 : vector<256x128xf32>
    %12 = arith.mulf %11, %7 : vector<256x128xf32>
    %cst_7 = arith.constant 0.797884583 : f32
    %13 = vector.broadcast %cst_7 : f32 to vector<256x128xf32>
    %14 = arith.addf %13, %12 : vector<256x128xf32>
    %15 = arith.mulf %7, %14 : vector<256x128xf32>
    %16 = math.tanh %15 : vector<256x128xf32>
    %cst_8 = arith.constant 1.000000e+00 : f32
    %17 = vector.broadcast %cst_8 : f32 to vector<256x128xf32>
    %18 = arith.addf %17, %16 : vector<256x128xf32>
    %19 = arith.mulf %9, %18 : vector<256x128xf32>
    %c0_9 = arith.constant 0 : index
    %c0_10 = arith.constant 0 : index
    %20 = vector.load %arg7[%c0_9, %c0_10] : memref<256x128xf32, #tpu.memory_space<vmem>>, vector<256x128xf32>
    %21 = arith.truncf %19 : vector<256x128xf32> to vector<256x128xbf16>
    %c0_11 = arith.constant 0 : index
    %c0_12 = arith.constant 0 : index
    %c0_13 = arith.constant 0 : index
    %22 = vector.load %arg5[%c0_11, %c0_12, %c0_13] : memref<1x128x128xbf16, #tpu.memory_space<vmem>>, vector<1x128x128xbf16>
    %23 = vector.shape_cast %22 : vector<1x128x128xbf16> to vector<128x128xbf16>
    %cst_14 = arith.constant dense<0.000000e+00> : vector<256x128xf32>
    %24 = tpu.matmul %21, %23, %cst_14 {dimension_numbers = #tpu.dot_dimension_numbers<[1], [0], [0], [1], [0, 0, 1, 1], [], []>} : vector<256x128xbf16>, vector<128x128xbf16>, vector<256x128xf32> -> vector<256x128xf32>
    %25 = arith.addf %20, %24 : vector<256x128xf32>
    %c0_15 = arith.constant 0 : index
    %c0_16 = arith.constant 0 : index
    %26 = vector.load %arg7[%c0_15, %c0_16] : memref<256x128xf32, #tpu.memory_space<vmem>>, vector<256x128xf32>
    tpu.vector_store %arg7[%c0_15, %c0_16], %25 {strides = array<i32>} : memref<256x128xf32, #tpu.memory_space<vmem>>, vector<256x128xf32>,
    %c1_i32 = arith.constant 1 : i32
    %27 = arith.cmpi eq, %arg1, %c1_i32 : i32
    %28 = arith.extui %27 : i1 to i32
    %c0_i32_17 = arith.constant 0 : i32
    %29 = arith.cmpi ne, %28, %c0_i32_17 : i32
    scf.if %29 {
      %c0_18 = arith.constant 0 : index
      %c0_19 = arith.constant 0 : index
      %30 = vector.load %arg7[%c0_18, %c0_19] : memref<256x128xf32, #tpu.memory_space<vmem>>, vector<256x128xf32>
      %c0_20 = arith.constant 0 : index
      %c0_21 = arith.constant 0 : index
      %31 = vector.load %arg6[%c0_20, %c0_21] : memref<256x128xf32, #tpu.memory_space<vmem>>, vector<256x128xf32>
      tpu.vector_store %arg6[%c0_20, %c0_21], %30 {strides = array<i32>} : memref<256x128xf32, #tpu.memory_space<vmem>>, vector<256x128xf32>,
    } else {
    }
    return
  }
  func.func @transform_0(%arg0: i32, %arg1: i32, %arg2: memref<2xi32, #tpu.memory_space<smem>>) -> (i32, i32) {
    %c0_i32 = arith.constant 0 : i32
    %c0_i32_0 = arith.constant 0 : i32
    return %arg0, %c0_i32 : i32, i32
  }
  func.func @transform_1(%arg0: i32, %arg1: i32, %arg2: memref<2xi32, #tpu.memory_space<smem>>) -> (i32, i32, i32) {
    %0 = arith.index_cast %arg0 : i32 to index
    %1 = memref.load %arg2[%0] : memref<2xi32, #tpu.memory_space<smem>>
    %c2_i32 = arith.constant 2 : i32
    %2 = arith.muli %1, %c2_i32 : i32
    %3 = arith.addi %2, %arg1 : i32
    %c0_i32 = arith.constant 0 : i32
    %c0_i32_0 = arith.constant 0 : i32
    %c0_i32_1 = arith.constant 0 : i32
    return %3, %c0_i32, %c0_i32_0 : i32, i32, i32
  }
  func.func @transform_2(%arg0: i32, %arg1: i32, %arg2: memref<2xi32, #tpu.memory_space<smem>>) -> (i32, i32, i32) {
    %0 = arith.index_cast %arg0 : i32 to index
    %1 = memref.load %arg2[%0] : memref<2xi32, #tpu.memory_space<smem>>
    %c2_i32 = arith.constant 2 : i32
    %2 = arith.muli %1, %c2_i32 : i32
    %3 = arith.addi %2, %arg1 : i32
    %c0_i32 = arith.constant 0 : i32
    %c0_i32_0 = arith.constant 0 : i32
    %c0_i32_1 = arith.constant 0 : i32
    return %3, %c0_i32, %c0_i32_0 : i32, i32, i32
  }
  func.func @transform_3(%arg0: i32, %arg1: i32, %arg2: memref<2xi32, #tpu.memory_space<smem>>) -> (i32, i32) {
    %c0_i32 = arith.constant 0 : i32
    %c0_i32_0 = arith.constant 0 : i32
    return %arg0, %c0_i32 : i32, i32
  }
}

</mosaic_0001>

<bundles_post_ra>
// kernel: sparse_mlp.1
= control target key start
LH: loop header
LB: loop body
LE: loop exit
PB: predicated region body
PF: predicated region fallthrough
CT: control target
= control target key end

     0   :  { %s2814_s0 = inlined_call_operand.vmem [shape: s32[2], index: 0, kind: input, shape index: {}]   ;;  %s2815_s1 = inlined_call_operand.hbm [shape: f32[512,128], index: 1, kind: input, shape index: {}]   ;;  %s2816_s2 = inlined_call_operand.hbm [shape: bf16[4,128,128], index: 2, kind: input, shape index: {}]   ;;  %s2817_s3 = inlined_call_operand.hbm [shape: bf16[4,128,128], index: 3, kind: input, shape index: {}]   ;;  %s2818_s4 = inlined_call_operand.hbm [shape: f32[512,128], index: 4, kind: output, shape index: {}]  }
   0x1   :  { %2837 = sst [smem:[#allocation31_spill]] %s2815_s1  ;;  %s9_s17 = sshll.u32 %s2814_s0, 4  ;;  %s10_s17 = int_to_ptr.vmem [resolvable:$true] %s9_s17 }
   0x2   :  { %2838 = sst [smem:[#allocation32_spill]] %s2816_s2  ;;  %s1854_s18 = scalar_lea.vmem %s10_s17, 16 }
   0x3   :  { %2839 = sst [smem:[#allocation33_spill]] %s2817_s3  ;;  %p1855_p0 = scmp.ne.s32.totalorder %s10_s17, %s1854_s18 }
   0x4   :  { %2840 = sst [smem:[#allocation34_spill]] %s2818_s4  ;;  %p1859_p1 = scmp.lt.s32.totalorder %s10_s17, %s10_s17 }
   0x5   :  { %p1860_p2 = scmp.lt.s32.totalorder %s1854_s18, %s1854_s18 }
   0x7   :  { %p1861_p3 = por %p1860_p2, %p1859_p1 }
   0x9   :  { %p1862_p4 = pnand %p1861_p3, %p1855_p0 }
   0xb   :  { %1865 = shalt.err (!%p1862_p4)  }
   0xc   :  { %s2106_s19 = smov [#allocation4]  }
   0xd   :  { %12 = dma.vmem_to_smem %s10_s17, 16, %s2106_s19, [#allocation3] }
   0xe   :  { %2032 = dma.done.wait [#allocation3], 16 }
   0xf   :  { %2033 = vsyncadd [#allocation3], 4294967280 }
  0x10   :  { %14 = sfence }
  0x11   :  { %15 = vsyncpa [#allocation6], 0 }
  0x12   :  { %17 = vsyncpa [#allocation6 + $0x1], 0 }
  0x13   :  { %18 = vsyncpa [#allocation9], 0 }
  0x14   :  { %20 = vsyncpa [#allocation9 + $0x1], 0 }
  0x15   :  { %21 = vsyncpa [#allocation7], 0 }
  0x16   :  { %23 = vsyncpa [#allocation7 + $0x1], 0  ;;  %s2146_s0 = smov 0   ;;  %s2148_s20 = smov 0  }
  0x17   :  { %s2150_s21 = smov 0   ;;  %s2152_s22 = smov 0  }
  0x18   :  { %s2154_s23 = smov 0   ;;  %s2156_s24 = smov 0  }
  0x19   :  { %s2158_s25 = smov 0   ;;  %s2160_s26 = smov 0  }
  0x1a   :  { %s2162_s27 = smov 0   ;;  %s2164_s28 = smov 0  }
  0x1b   :  { %s2166_s29 = smov 0   ;;  %s2168_s30 = smov 0  }
  0x1c   :  { %s2170_s5 = smov 0   ;;  %s2172_s6 = smov 0  }
  0x1d LB: > { %2841 = sst [smem:[#allocation21_spill]] %s2052_s0  ;;  %s2215_s7 = sadd.s32 4294967295, %s2104_s6   ;;  %s2104_s6 = sphi %s2172_s6, %s29_s6   ;;  %s2100_s5 = sphi %s2170_s5, %s2900_s5   ;;  %s2096_s30 = sphi %s2168_s30, %s2910_s30   ;;  %s2092_s29 = sphi %s2166_s29, %s2898_s29   ;;  %s2088_s28 = sphi %s2164_s28, %s2909_s28   ;;  %s2084_s27 = sphi %s2162_s27, %s2908_s27   ;;  %s2080_s26 = sphi %s2160_s26, %s2907_s26   ;;  %s2076_s25 = sphi %s2158_s25, %s2906_s25   ;;  %s2072_s24 = sphi %s2156_s24, %s2905_s24   ;;  %s2068_s23 = sphi %s2154_s23, %s2904_s23   ;;  %s2064_s22 = sphi %s2152_s22, %s2895_s22   ;;  %s2060_s21 = sphi %s2150_s21, %s2903_s21   ;;  %s2056_s20 = sphi %s2148_s20, %s2902_s20   ;;  %s2052_s0 = sphi %s2146_s0, %s2901_s0  }
  0x1e   : > { %2842 = sst [smem:[#allocation22_spill]] %s2056_s20  ;;  %s38_s8 = sadd.s32 1, %s2096_s30 }
  0x1f   : > { %2843 = sst [smem:[#allocation23_spill]] %s2068_s23  ;;  %p39_p5 = scmp.ge.s32.totalorder %s38_s8, 2 }
  0x20   : > { %2844 = sst [smem:[#allocation24_spill]] %s2088_s28  ;;  %s41_s9 = sadd.s32 1, %s2100_s5 }
  0x21   : > { %2845 = sst [smem:[#allocation25_spill]] %s2092_s29  ;;  %p2827_p6 = scmp.eq.s32.totalorder %s2104_s6, 0 }
  0x22   : > { %2846 = sst [smem:[#allocation26_spill]] %s2100_s5  ;;  %p2826_p7 = scmp.eq.s32.totalorder %s2215_s7, 0 }
  0x23   : > { %s2912_s8 = smov (%p39_p5, %s38_s8), 0  ;;  %s2914_s9 = smov (!%p39_p5, %s41_s9), %s2100_s5 }
  0x24   : > { %2847 = sst [smem:[#allocation27_spill]] %s2912_s8  ;;  %s80_s11 = sadd.s32 1, %s2072_s24 }
  0x25   : > { %s71_s10 = sld [smem:[#allocation4 + %s2100_s5]]  ;;  %p43_p8 = scmp.ge.s32.totalorder %s2914_s9, 2 }
  0x26   : > { %p87_p9 = scmp.ne.s32.totalorder %s2072_s24, %s2068_s23  ;;  %p93_p10 = scmp.ne.s32.totalorder %s2068_s23, %s2064_s22 }
  0x27   : > { %s103_s12 = sld [smem:[#allocation4 + %s2100_s5]]  ;;  %s2916_s9 = smov (%p43_p8, %s2914_s9), 0 }
  0x28   : > { %2848 = sst [smem:[#allocation28_spill]] %s2916_s9  ;;  %p2234_p11 = por %p87_p9, %p2827_p6 }
  0x29   : > { %p2240_p12 = por %p93_p10, %p2826_p7  ;;  %s74_s15 = sld [smem:[#allocation4 + %s2916_s9]] }
  0x2a   : > { %s106_s17 = sld [smem:[#allocation4 + %s2916_s9]]  ;;  %p2825_p13 = scmp.lt.s32.totalorder %s2104_s6, 4 }
  0x2b   : > { %s2850_s14 = scalar_select %p2240_p12, 1, 0 }
  0x2c   : > { %s1429_s16 = sshll.u32 %s71_s10, 1  ;;  %s198_s29 = sand.u32 1, %s2072_s24  }
  0x2d   : > { %2851 = sst [smem:[#allocation29_spill]] %s2850_s14  ;;  %s73_s18 = sadd.s32 %s2096_s30, %s1429_s16 }
  0x2e   : > { %s1431_s19 = sshll.u32 %s103_s12, 1  ;;  %p2255_p0 = pnand %p2825_p13, %p2234_p11 }
  0x2f   : > { %s105_s4 = sadd.s32 %s2096_s30, %s1431_s19  ;;  %s1430_s10 = sshll.u32 %s74_s15, 1 }
  0x30   : > { %s1438_s14 = sshll.u32 %s198_s29, 6  ;;  %s76_s16 = sadd.s32 %s1430_s10, %s2912_s8 }
  0x31   : > { %s1432_s23 = sshll.u32 %s106_s17, 1  ;;  %s77_s12 = ssub.s32 %s73_s18, %s76_s16 }
  0x32   : > { %s108_s3 = sadd.s32 %s1432_s23, %s2912_s8  ;;  %p78_p1 = scmp.eq.s32.totalorder %s77_s12, 0 }
  0x33   : > { %s109_s22 = ssub.s32 %s105_s4, %s108_s3  ;;  %s200_s23 = scalar_lea.vmem [#allocation8], %s1438_s14 }
  0x34   : > { %p2261_p2 = scmp.eq.s32.totalorder %s109_s22, 0  ;;  %s210_s15 = sshll.u32 %s200_s23, 4  ;;  %s2277_s15 = int_to_ptr.vmem [resolvable:$true] %s210_s15 }
  0x35   : > { %s2266_s0 = scalar_select %p78_p1, %s2072_s24, %s80_s11  }
  0x36   : > { %s2853_s19 = scalar_select %p2261_p2, 1, 0 }
  0x37   : > { %s1623_s20 = scalar_select %p2234_p11, [#allocation4], [#allocation12] }
  0x38   : > { %s1624_s29 = scalar_select %p2234_p11, %s2100_s5, 0 }
  0x39   : > { %s2918_s20 = smov (!%p2825_p13, %s1623_s20), [#allocation14]  ;;  %p1446_p3 = scmp.ge.s32.totalorder %s2104_s6, 1 }
  0x3a   : > { %s2920_s29 = smov (!%p2825_p13, %s1624_s29), 0  ;;  %p242_p4 = scmp.lt.s32.totalorder %s2104_s6, 5 }
  0x3b   : > { %s201_s17 = sld [smem:[%s2918_s20 + %s2920_s29]]  ;;  %s2856_s16 = sand.u32 1, %s2104_s6  }
  0x3c   : > { %p2281_p5 = pnand %p1446_p3, %p242_p4  ;;  %s2855_s2 = sld [smem:[#allocation32_spill]] }
  0x3d   : > { %s2293_s20 = scalar_lea.sflag [#allocation9], %s2856_s16  ;;  %p1868_p9 = pneg %p2255_p0 }
  0x3e   : > { %s2854_s3 = scalar_select %p2281_p5, 1, 0 }
  0x41   : > { %s1439_s4 = sshll.u32 %s201_s17, 1 }
  0x42   : > { %s203_s11 = sadd.s32 %s2096_s30, %s1439_s4  ;;  %s1871_s23 = scalar_lea.hbm %s2855_s2, 4096 }
  0x43   : > { %s1475_s13 = sshll.u32 %s203_s11, 10 }
  0x44   : > { %s2289_s10 = scalar_lea.hbm %s2855_s2, %s1475_s13 }
  0x45   : > { %s1866_s14 = scalar_lea.hbm %s2289_s10, 1024  ;;  %p1872_p1 = scmp.lt.s32.totalorder %s2289_s10, %s2855_s2 }
  0x46   : > { %p1867_p8 = scmp.ne.s32.totalorder %s2289_s10, %s1866_s14  ;;  %p1873_p3 = scmp.lt.s32.totalorder %s1871_s23, %s1866_s14 }
  0x48   : > { %p1869_p10 = pnand %p1868_p9, %p1867_p8  ;;  %p1874_p4 = por %p1873_p3, %p1872_p1 }
  0x4a   : > { %p1870_p11 = pneg %p1869_p10 }
  0x4c   : > { %p1875_p13 = pnand %p1874_p4, %p1870_p11 }
  0x4e   : > { %1878 = shalt.err (!%p1875_p13)
}
  0x4f   : > { %s1879_s11 = scalar_lea.vmem %s2277_s15, 1024  ;;  %s2107_s13 = smov [#allocation8]  }
  0x50   : > { %p1880_p7 = scmp.ne.s32.totalorder %s2277_s15, %s1879_s11  ;;  %s1884_s18 = sshll.u32 %s2107_s13, 4  ;;  %s1885_s18 = int_to_ptr.vmem [resolvable:$false] %s1884_s18 }
  0x51   : > { %s1886_s22 = scalar_lea.vmem %s1885_s18, 2048  ;;  %p1887_p10 = scmp.lt.s32.totalorder %s2277_s15, %s1885_s18 }
  0x52   : > { %p1882_p6 = pnand %p1880_p7, %p1868_p9  ;;  %p1888_p12 = scmp.lt.s32.totalorder %s1886_s22, %s1879_s11 }
  0x54   : > { %p1883_p8 = pneg %p1882_p6  ;;  %p1889_p5 = por %p1888_p12, %p1887_p10 }
  0x56   : > { %p1890_p2 = pnand %p1889_p5, %p1883_p8 }
  0x58   : > { %1893 = shalt.err (!%p1890_p2)
}
  0x59   : > { %s2829_s16 = smov 64   ;;  %s2830_s14 = smov 4  }
  0x5a   : > { %1642 = dma.hbm_to_vmem [thread:$0]  (!%p2255_p0), %s2289_s10, 1024, %s2277_s15, %s2293_s20, %s2829_s16, %s2829_s16, %s2830_s14  }
  0x5b   : > { %s1428_s12 = sadd.s32 4294967294, %s2104_s6   ;;  %s45_s29 = ssub.s32 %s2100_s5, %s2916_s9 }
  0x5c   : > { %s48_s23 = sadd.s32 1, %s2084_s27  ;;  %p46_p6 = scmp.eq.s32.totalorder %s45_s29, 0 }
  0x5d   : > { %p55_p7 = scmp.ne.s32.totalorder %s2084_s27, %s2080_s26  ;;  %p61_p12 = scmp.ne.s32.totalorder %s2080_s26, %s2076_s25 }
  0x5e   : > { %p149_p13 = scmp.eq.s32.totalorder %s2215_s7, 3  ;;  %p2858_p2 = scmp.eq.s32.totalorder %s2104_s6, 0 }
  0x5f   : > { %s2327_s17 = scalar_select %p46_p6, %s2084_s27, %s48_s23  }
  0x60   : > { %p57_p5 = por %p2858_p2, %p55_p7  ;;  %p2859_p9 = scmp.eq.s32.totalorder %s2215_s7, 0 }
  0x61   : > { %2857 = sst [smem:[#allocation30_spill]] %s2327_s17  ;;  %p2337_p1 = por %p149_p13, %p55_p7 }
  0x62   : > { %p2333_p11 = por %p2859_p9, %p61_p12  ;;  %p155_p0 = scmp.eq.s32.totalorder %s1428_s12, 3 }
  0x63   : > { %s2861_s28 = scalar_select %p2337_p1, 1, 0 }
  0x64   : > { %s2860_s4 = scalar_select %p2333_p11, 1, 0 }
  0x65   : > { %s175_s15 = sand.u32 1, %s2084_s27   ;;  %s1474_s10 = sshll.u32 %s2100_s5, 12 }
  0x66   : > { %p2343_p3 = por %p155_p0, %p61_p12  ;;  %s1435_s13 = sshll.u32 %s175_s15, 8 }
  0x67   : > { %s2863_s1 = sld [smem:[#allocation31_spill]]  ;;  %p2864_p4 = scmp.lt.s32.totalorder %s2104_s6, 4 }
  0x68   : > { %s2862_s11 = scalar_select %p2343_p3, 1, 0 }
  0x69   : > { %p2352_p8 = pnand %p2864_p4, %p57_p5  ;;  %s179_s16 = scalar_lea.vmem [#allocation5], %s1435_s13 }
  0x6a   : > { %s186_s14 = sshll.u32 %s179_s16, 4  ;;  %s176_s12 = scalar_lea.sflag [#allocation6], %s175_s15  ;;  %s187_s14 = int_to_ptr.vmem [resolvable:$true] %s186_s14 }
  0x6b   : > { %p1896_p10 = pneg %p2352_p8  ;;  %s1907_s2 = scalar_lea.vmem %s187_s14, 4096 }
  0x6c   : > { %p1908_p6 = scmp.ne.s32.totalorder %s187_s14, %s1907_s2  ;;  %s2110_s9 = smov [#allocation5]  }
  0x6d   : > { %s185_s29 = scalar_lea.hbm %s2863_s1, %s1474_s10  ;;  %s1912_s8 = sshll.u32 %s2110_s9, 4  ;;  %s1913_s8 = int_to_ptr.vmem [resolvable:$false] %s1912_s8 }
  0x6e   : > { %p1910_p7 = pnand %p1908_p6, %p1896_p10  ;;  %s1914_s10 = scalar_lea.vmem %s1913_s8, 8192 }
  0x6f   : > { %p1915_p13 = scmp.lt.s32.totalorder %s187_s14, %s1913_s8  ;;  %p1916_p2 = scmp.lt.s32.totalorder %s1914_s10, %s1907_s2 }
  0x70   : > { %p1911_p12 = pneg %p1910_p7 }
  0x71   : > { %p1917_p5 = por %p1916_p2, %p1915_p13 }
  0x73   : > { %p1918_p9 = pnand %p1917_p5, %p1911_p12 }
  0x75   : > { %1921 = shalt.err (!%p1918_p9)
}
  0x76   : > { %s2111_s18 = smov 128   ;;  %s2866_s16 = sld [smem:[#allocation22_spill]] }
  0x77   : > { %s2867_s15 = sld [smem:[#allocation21_spill]]  ;;  %s2112_s2 = smov 8  }
  0x78   : > { %1637 = dma.hbm_to_vmem [thread:$0]  (!%p2352_p8), %s185_s29, 4096, %s187_s14, %s176_s12, %s2111_s18, %s2111_s18, %s2112_s2  }
  0x79   : > { %s112_s8 = sadd.s32 1, %s2060_s21  ;;  %p2868_p0 = scmp.ne.s32.totalorder %s2853_s19, 0 }
  0x7a   : > { %s222_s13 = sand.u32 1, %s2060_s21   ;;  %p2869_p6 = scmp.eq.s32.totalorder %s2104_s6, 0 }
  0x7b   : > { %s2364_s9 = scalar_select %p2868_p0, %s2060_s21, %s112_s8  }
  0x7c   : > { %p119_p4 = scmp.ne.s32.totalorder %s2060_s21, %s2866_s16  ;;  %p2870_p12 = scmp.eq.s32.totalorder %s2215_s7, 0 }
  0x7d   : > { %p125_p10 = scmp.ne.s32.totalorder %s2866_s16, %s2867_s15  ;;  %s1442_s10 = sshll.u32 %s222_s13, 6 }
  0x7e   : > { %p121_p7 = por %p119_p4, %p2869_p6  ;;  %p2872_p2 = scmp.lt.s32.totalorder %s2104_s6, 4 }
  0x7f   : > { %p2375_p13 = por %p125_p10, %p2870_p12  ;;  %s224_s12 = scalar_lea.vmem [#allocation10], %s1442_s10 }
  0x80   : > { %p2381_p5 = pnand %p2872_p2, %p121_p7  ;;  %p2874_p8 = pmov %p2872_p2 }
  0x81   : > { %s2871_s22 = scalar_select %p2375_p13, 1, 0 }
  0x82   : > { %s1626_s19 = scalar_select %p121_p7, [#allocation4], [#allocation13] }
  0x83   : > { %s1627_s14 = scalar_select %p121_p7, %s2100_s5, 0 }
  0x84   : > { %s2922_s19 = smov (!%p2874_p8, %s1626_s19), [#allocation15]  ;;  %p2875_p9 = pmov %p2872_p2 }
  0x85   : > { %s234_s18 = sshll.u32 %s224_s12, 4  ;;  %s2876_s1 = sld [smem:[#allocation33_spill]]  ;;  %s2391_s18 = int_to_ptr.vmem [resolvable:$true] %s234_s18 }
  0x86   : > { %s2924_s14 = smov (!%p2875_p9, %s1627_s14), 0  ;;  %p1924_p4 = pneg %p2381_p5 }
  0x87   : > { %s225_s29 = sld [smem:[%s2922_s19 + %s2924_s14]] }
  0x8b   : > { %s1927_s14 = scalar_lea.hbm %s2876_s1, 4096 }
  0x8d   : > { %s1443_s16 = sshll.u32 %s225_s29, 1 }
  0x8e   : > { %s227_s15 = sadd.s32 %s2096_s30, %s1443_s16 }
  0x8f   : > { %s1476_s2 = sshll.u32 %s227_s15, 10 }
  0x90   : > { %s2396_s17 = scalar_lea.hbm %s2876_s1, %s1476_s2 }
  0x91   : > { %s1922_s5 = scalar_lea.hbm %s2396_s17, 1024  ;;  %p1928_p7 = scmp.lt.s32.totalorder %s2396_s17, %s2876_s1 }
  0x92   : > { %p1923_p0 = scmp.ne.s32.totalorder %s2396_s17, %s1922_s5  ;;  %p1929_p12 = scmp.lt.s32.totalorder %s1927_s14, %s1922_s5 }
  0x94   : > { %p1925_p10 = pnand %p1924_p4, %p1923_p0  ;;  %p1930_p2 = por %p1929_p12, %p1928_p7 }
  0x96   : > { %p1926_p6 = pneg %p1925_p10 }
  0x98   : > { %p1931_p8 = pnand %p1930_p2, %p1926_p6 }
  0x9a   : > { %1934 = shalt.err (!%p1931_p8)
}
  0x9b   : > { %s1935_s16 = scalar_lea.vmem %s2391_s18, 1024  ;;  %s2113_s15 = smov [#allocation10]  }
  0x9c   : > { %p1936_p9 = scmp.ne.s32.totalorder %s2391_s18, %s1935_s16  ;;  %s1940_s2 = sshll.u32 %s2113_s15, 4  ;;  %s1941_s2 = int_to_ptr.vmem [resolvable:$false] %s1940_s2 }
  0x9d   : > { %s1942_s8 = scalar_lea.vmem %s1941_s2, 2048  ;;  %p1943_p10 = scmp.lt.s32.totalorder %s2391_s18, %s1941_s2 }
  0x9e   : > { %p1938_p3 = pnand %p1936_p9, %p1924_p4  ;;  %p1944_p1 = scmp.lt.s32.totalorder %s1942_s8, %s1935_s16 }
  0xa0   : > { %p1939_p0 = pneg %p1938_p3  ;;  %p1945_p13 = por %p1944_p1, %p1943_p10 }
  0xa2   : > { %p1946_p11 = pnand %p1945_p13, %p1939_p0 }
  0xa4   : > { %1949 = shalt.err (!%p1946_p11)
}
  0xa5   : > { %s2877_s5 = smov 4   ;;  %s2878_s13 = smov 64  }
  0xa6   : > { %1647 = dma.hbm_to_vmem [thread:$0]  (!%p2381_p5), %s2396_s17, 1024, %s2391_s18, %s2293_s20, %s2878_s13, %s2878_s13, %s2877_s5  }
  0xa7   : > { %p2879_p3 = scmp.ne.s32.totalorder %s2854_s3, 0 }
  0xa8   : > { %s2423_s10 = sand.u32 (!%p2879_p3), 1, %s2080_s26   ;;  %p2880_p11 = scmp.ne.s32.totalorder (!%p2879_p3), %s2860_s4, 0 }
  0xa9   : > { %246 = sbr.rel (%p2879_p3) target bundleno = 791 (0x317), region = 32  ;;  %s1447_s19 = sshll.u32 (!%p2879_p3), %s2423_s10, 8 }
  0xaa   : > { %s249_s14 = scalar_lea.sflag (!%p2879_p3), [#allocation6], %s2423_s10  ;;  %s2427_s29 = scalar_lea.vmem (!%p2879_p3), [#allocation5], %s1447_s19 }
  0xae   : > { %2035 = dma.done.wait (%p2880_p11), %s249_s14, 4096  }
  0xaf   : > { %2037 = vsyncadd (%p2880_p11), %s249_s14, 4294963200  ;;  %s2881_s20 = sld [smem:[#allocation23_spill]]  ;;  %s257_s3 = sand.u32 1, %s2215_s7  }
  0xb0   : > { %s2882_s17 = sld [smem:[#allocation29_spill]]  ;;  %s258_s12 = scalar_lea.sflag [#allocation9], %s257_s3 }
  0xb5   : > { %s259_s23 = sand.u32 1, %s2881_s20  }
  0xb6   : > { %s1448_s18 = sshll.u32 %s259_s23, 6  ;;  %p2883_p1 = scmp.ne.s32.totalorder %s2882_s17, 0 }
  0xb7   : > { %s2435_s16 = scalar_lea.vmem [#allocation8], %s1448_s18 }
  0xb8   : > { %2039 = dma.done.wait (%p2883_p1), %s258_s12, 1024  }
  0xb9   : > { %2041 = vsyncadd (%p2883_p1), %s258_s12, 4294966272  ;;  %s2884_s15 = sld [smem:[#allocation22_spill]]  ;;  %p2885_p13 = scmp.ne.s32.totalorder %s2871_s22, 0 }
  0xbf   : > { %s268_s2 = sand.u32 1, %s2884_s15  }
  0xc0   : > { %s1449_s8 = sshll.u32 %s268_s2, 6 }
  0xc1   : > { %s2442_s4 = scalar_lea.vmem [#allocation10], %s1449_s8 }
  0xc2   : > { %2043 = dma.done.wait (%p2885_p13), %s258_s12, 1024  }
  0xc3   : > { %2045 = vsyncadd (%p2885_p13), %s258_s12, 4294966272  ;;  %s2448_s7 = scalar_lea.vmem [#allocation11], %s1447_s19  ;;  %s2886_s5 = sld [smem:[#allocation24_spill]] }
  0xc9   : > { %p1451_p5 = scmp.ne.s32.totalorder %s2886_s5, 0 }
  0xcb   : > { %315 = sbr.rel (%p1451_p5) target bundleno = 225 (0xe1), region = 48 }
  0xd0   : > { %v2114_v0 = vmov 0.0  }
  0xd1   : > { %316 = vst [vmem:[#allocation2 + $0xb0] sm:$0xff] %v2114_v0  ;;  %317 = vst [vmem:[#allocation2] sm:$0xff] %v2114_v0 }
  0xd2   : > { %318 = vst [vmem:[#allocation2 + $0xd8] sm:$0xff] %v2114_v0  ;;  %319 = vst [vmem:[#allocation2 + $0x18] sm:$0xff] %v2114_v0 }
  0xd3   : > { %320 = vst [vmem:[#allocation2 + $0x50] sm:$0xff] %v2114_v0  ;;  %321 = vst [vmem:[#allocation2 + $0x68] sm:$0xff] %v2114_v0 }
  0xd4   : > { %322 = vst [vmem:[#allocation2 + $0x30] sm:$0xff] %v2114_v0  ;;  %323 = vst [vmem:[#allocation2 + $0x48] sm:$0xff] %v2114_v0 }
  0xd5   : > { %324 = vst [vmem:[#allocation2 + $0x80] sm:$0xff] %v2114_v0  ;;  %325 = vst [vmem:[#allocation2 + $0x88] sm:$0xff] %v2114_v0 }
  0xd6   : > { %326 = vst [vmem:[#allocation2 + $0xe8] sm:$0xff] %v2114_v0  ;;  %327 = vst [vmem:[#allocation2 + $0xb8] sm:$0xff] %v2114_v0 }
  0xd7   : > { %328 = vst [vmem:[#allocation2 + $0x60] sm:$0xff] %v2114_v0  ;;  %329 = vst [vmem:[#allocation2 + $0xf0] sm:$0xff] %v2114_v0 }
  0xd8   : > { %330 = vst [vmem:[#allocation2 + $0x8] sm:$0xff] %v2114_v0  ;;  %331 = vst [vmem:[#allocation2 + $0x78] sm:$0xff] %v2114_v0 }
  0xd9   : > { %332 = vst [vmem:[#allocation2 + $0x38] sm:$0xff] %v2114_v0  ;;  %333 = vst [vmem:[#allocation2 + $0x58] sm:$0xff] %v2114_v0 }
  0xda   : > { %334 = vst [vmem:[#allocation2 + $0x40] sm:$0xff] %v2114_v0  ;;  %335 = vst [vmem:[#allocation2 + $0xc8] sm:$0xff] %v2114_v0 }
  0xdb   : > { %336 = vst [vmem:[#allocation2 + $0xe0] sm:$0xff] %v2114_v0  ;;  %337 = vst [vmem:[#allocation2 + $0x90] sm:$0xff] %v2114_v0 }
  0xdc   : > { %338 = vst [vmem:[#allocation2 + $0x70] sm:$0xff] %v2114_v0  ;;  %339 = vst [vmem:[#allocation2 + $0xc0] sm:$0xff] %v2114_v0 }
  0xdd   : > { %340 = vst [vmem:[#allocation2 + $0xa8] sm:$0xff] %v2114_v0  ;;  %341 = vst [vmem:[#allocation2 + $0xd0] sm:$0xff] %v2114_v0 }
  0xde   : > { %342 = vst [vmem:[#allocation2 + $0x10] sm:$0xff] %v2114_v0  ;;  %343 = vst [vmem:[#allocation2 + $0x28] sm:$0xff] %v2114_v0 }
  0xdf   : > { %344 = vst [vmem:[#allocation2 + $0xa0] sm:$0xff] %v2114_v0  ;;  %345 = vst [vmem:[#allocation2 + $0xf8] sm:$0xff] %v2114_v0 }
  0xe0   : > { %346 = vst [vmem:[#allocation2 + $0x20] sm:$0xff] %v2114_v0  ;;  %347 = vst [vmem:[#allocation2 + $0x98] sm:$0xff] %v2114_v0 }
  0xe1 PF: > { %v1774_v1 = vld [vmem:[%s2435_s16 + $0x38] sm:$0xff]   ;;  %v1775_v2 = vld [vmem:[%s2435_s16 + $0x30] sm:$0xff]   ;;  %v1776_v3 = vld [vmem:[%s2435_s16 + $0x28] sm:$0xff]   ;;  %s2887_s22 = sld [smem:[#allocation24_spill]] }
  0xe2   : > { %1526 = vmatprep.subr.bf16.mxu0 %v1774_v1  ;;  %v1777_v4 = vld [vmem:[%s2435_s16 + $0x20] sm:$0xff]   ;;  %v349_v6 = vld [vmem:[%s2427_s29 + $0x8] sm:$0xff]  ;;  %v1778_v8 = vld [vmem:[%s2435_s16 + $0x18] sm:$0xff]  }
  0xe3   : > { %1527 = vmatpush3.bf16.msra.mxu0 %v1774_v1  ;;  %v348_v5 = vld [vmem:[%s2427_s29] sm:$0xff]  ;;  %v1779_v9 = vld [vmem:[%s2435_s16 + $0x10] sm:$0xff]   ;;  %v1780_v10 = vld [vmem:[%s2435_s16 + $0x8] sm:$0xff]  }
  0xe4   : > { %1528 = vmatprep.subr.bf16.mxu0 %v1775_v2  ;;  %v380_v7 = vpack.c.bf16 %v349_v6, %v348_v5  ;;  %v1781_v11 = vld [vmem:[%s2435_s16] sm:$0xff]   ;;  %v350_v12 = vld [vmem:[%s2427_s29 + $0x10] sm:$0xff]  ;;  %v351_v13 = vld [vmem:[%s2427_s29 + $0x18] sm:$0xff] }
  0xe5   : > { %v352_v14 = vld [vmem:[%s2427_s29 + $0x20] sm:$0xff]  ;;  %v353_v15 = vld [vmem:[%s2427_s29 + $0x28] sm:$0xff]  ;;  %v381_v16 = vpack.c.bf16 %v351_v13, %v350_v12  ;;  %v354_v18 = vld [vmem:[%s2427_s29 + $0x30] sm:$0xff] }
  0xe6   : > { %1542 = vmatprep.mubr.bf16.mxu0 %v380_v7  ;;  %v382_v17 = vpack.c.bf16 %v353_v15, %v352_v14  ;;  %v355_v19 = vld [vmem:[%s2427_s29 + $0x38] sm:$0xff]  ;;  %v356_v20 = vld [vmem:[%s2427_s29 + $0x40] sm:$0xff]  ;;  %v357_v21 = vld [vmem:[%s2427_s29 + $0x48] sm:$0xff] }
  0xe7   : > { %1529 = vmatpush3.bf16.msra.mxu0 %v1775_v2  ;;  %v383_v22 = vpack.c.bf16 %v355_v19, %v354_v18  ;;  %v384_v23 = vpack.c.bf16 %v357_v21, %v356_v20  ;;  %v358_v24 = vld [vmem:[%s2427_s29 + $0x50] sm:$0xff]  ;;  %v359_v25 = vld [vmem:[%s2427_s29 + $0x58] sm:$0xff]  ;;  %v360_v26 = vld [vmem:[%s2427_s29 + $0x60] sm:$0xff]  ;;  %p1468_p4 = scmp.ne.s32.totalorder %s2887_s22, 1 }
  0xe8   : > { %1530 = vmatprep.subr.bf16.mxu0 %v1776_v3  ;;  %v361_v27 = vld [vmem:[%s2427_s29 + $0x68] sm:$0xff]  ;;  %v385_v28 = vpack.c.bf16 %v359_v25, %v358_v24  ;;  %v362_v30 = vld [vmem:[%s2427_s29 + $0x70] sm:$0xff]  ;;  %v363_v31 = vld [vmem:[%s2427_s29 + $0x78] sm:$0xff] }
  0xe9   : > { %v386_v29 = vpack.c.bf16 %v361_v27, %v360_v26  ;;  %v364_v32 = vld [vmem:[%s2427_s29 + $0x80] sm:$0xff]  ;;  %v365_v33 = vld [vmem:[%s2427_s29 + $0x88] sm:$0xff]  ;;  %v387_v34 = vpack.c.bf16 %v363_v31, %v362_v30  ;;  %v366_v36 = vld [vmem:[%s2427_s29 + $0x90] sm:$0xff] }
  0xea   : > { %v388_v35 = vpack.c.bf16 %v365_v33, %v364_v32  ;;  %v367_v37 = vld [vmem:[%s2427_s29 + $0x98] sm:$0xff]  ;;  %v368_v38 = vld [vmem:[%s2427_s29 + $0xa0] sm:$0xff]  ;;  %v369_v39 = vld [vmem:[%s2427_s29 + $0xa8] sm:$0xff] }
  0xeb   : > { %1531 = vmatpush3.bf16.msra.mxu0 %v1776_v3  ;;  %v389_v40 = vpack.c.bf16 %v367_v37, %v366_v36  ;;  %v390_v41 = vpack.c.bf16 %v369_v39, %v368_v38  ;;  %v370_v42 = vld [vmem:[%s2427_s29 + $0xb0] sm:$0xff]  ;;  %v371_v43 = vld [vmem:[%s2427_s29 + $0xb8] sm:$0xff]  ;;  %v372_v44 = vld [vmem:[%s2427_s29 + $0xc0] sm:$0xff] }
  0xec   : > { %1532 = vmatprep.subr.bf16.mxu0 %v1777_v4  ;;  %v373_v45 = vld [vmem:[%s2427_s29 + $0xc8] sm:$0xff]  ;;  %v391_v46 = vpack.c.bf16 %v371_v43, %v370_v42  ;;  %v374_v48 = vld [vmem:[%s2427_s29 + $0xd0] sm:$0xff]  ;;  %v375_v49 = vld [vmem:[%s2427_s29 + $0xd8] sm:$0xff] }
  0xed   : > { %v392_v47 = vpack.c.bf16 %v373_v45, %v372_v44  ;;  %v376_v50 = vld [vmem:[%s2427_s29 + $0xe0] sm:$0xff]  ;;  %v377_v51 = vld [vmem:[%s2427_s29 + $0xe8] sm:$0xff]  ;;  %v393_v52 = vpack.c.bf16 %v375_v49, %v374_v48  ;;  %v378_v54 = vld [vmem:[%s2427_s29 + $0xf0] sm:$0xff] }
  0xee   : > { %v394_v53 = vpack.c.bf16 %v377_v51, %v376_v50  ;;  %v379_v55 = vld [vmem:[%s2427_s29 + $0xf8] sm:$0xff]  ;;  %v1783_v58 = vld [vmem:[%s2442_s4 + $0x30] sm:$0xff]   ;;  %v1784_v59 = vld [vmem:[%s2442_s4 + $0x28] sm:$0xff]  }
  0xef   : > { %1533 = vmatpush3.bf16.msra.mxu0 %v1777_v4  ;;  %v395_v56 = vpack.c.bf16 %v379_v55, %v378_v54  ;;  %v1782_v57 = vld [vmem:[%s2442_s4 + $0x38] sm:$0xff]   ;;  %v1785_v60 = vld [vmem:[%s2442_s4 + $0x20] sm:$0xff]   ;;  %v1787_v62 = vld [vmem:[%s2442_s4 + $0x10] sm:$0xff]  }
  0xf0   : > { %1534 = vmatprep.subr.bf16.mxu0 %v1778_v8  ;;  %1574 = vmatprep.subr.bf16.mxu1 %v1782_v57  ;;  %v1786_v61 = vld [vmem:[%s2442_s4 + $0x18] sm:$0xff]   ;;  %v1788_v63 = vld [vmem:[%s2442_s4 + $0x8] sm:$0xff]   ;;  %v1789_v0 = vld [vmem:[%s2442_s4] sm:$0xff]  }
  0xf1   : > { %1575 = vmatpush3.bf16.msra.mxu1 %v1782_v57 }
  0xf2   : > { %1576 = vmatprep.subr.bf16.mxu1 %v1783_v58 }
  0xf3   : > { %1535 = vmatpush3.bf16.msra.mxu0 %v1778_v8 }
  0xf4   : > { %1536 = vmatprep.subr.bf16.mxu0 %v1779_v9 }
  0xf5   : > { %1577 = vmatpush3.bf16.msra.mxu1 %v1783_v58 }
  0xf6   : > { %1578 = vmatprep.subr.bf16.mxu1 %v1784_v59 }
  0xf7   : > { %1537 = vmatpush3.bf16.msra.mxu0 %v1779_v9 }
  0xf8   : > { %1538 = vmatprep.subr.bf16.mxu0 %v1780_v10 }
  0xf9   : > { %1579 = vmatpush3.bf16.msra.mxu1 %v1784_v59 }
  0xfa   : > { %1580 = vmatprep.subr.bf16.mxu1 %v1785_v60 }
  0xfb   : > { %1539 = vmatpush3.bf16.msra.mxu0 %v1780_v10 }
  0xfc   : > { %1540 = vmatprep.subr.bf16.mxu0 %v1781_v11 }
  0xfd   : > { %1581 = vmatpush3.bf16.msra.mxu1 %v1785_v60 }
  0xfe   : > { %1582 = vmatprep.subr.bf16.mxu1 %v1786_v61 }
  0xff   : > { %1541 = vmatpush3.bf16.msra.mxu0 %v1781_v11 }
 0x101   : > { %1583 = vmatpush3.bf16.msra.mxu1 %v1786_v61 }
 0x102   : > { %1543 = vmatmul.mubr.bf16.vlgmr.msra.gmra.mxu0 %v381_v16  ;;  %1584 = vmatprep.subr.bf16.mxu1 %v1787_v62 }
 0x103   : > { %1546 = vmatprep.mubr.bf16.mxu0 %v382_v17 }
 0x105   : > { %1585 = vmatpush3.bf16.msra.mxu1 %v1787_v62 }
 0x106   : > { %1586 = vmatprep.subr.bf16.mxu1 %v1788_v63 }
 0x109   : > { %1587 = vmatpush3.bf16.msra.mxu1 %v1788_v63 }
 0x10a   : > { %1547 = vmatmul.mubr.bf16.gmra.mxu0 %v383_v22  ;;  %1588 = vmatprep.subr.bf16.mxu1 %v1789_v0 }
 0x10b   : > { %1550 = vmatprep.mubr.bf16.mxu0 %v384_v23 }
 0x10d   : > { %1589 = vmatpush3.bf16.msra.mxu1 %v1789_v0 }
 0x112   : > { %1551 = vmatmul.mubr.bf16.gmra.mxu0 %v385_v28 }
 0x113   : > { %1554 = vmatprep.mubr.bf16.mxu0 %v386_v29 }
 0x11a   : > { %1555 = vmatmul.mubr.bf16.gmra.mxu0 %v387_v34 }
 0x11b   : > { %1558 = vmatprep.mubr.bf16.mxu0 %v388_v35 }
 0x122   : > { %1559 = vmatmul.mubr.bf16.gmra.mxu0 %v389_v40 }
 0x123   : > { %1562 = vmatprep.mubr.bf16.mxu0 %v390_v41 }
 0x12a   : > { %1563 = vmatmul.mubr.bf16.gmra.mxu0 %v391_v46 }
 0x12b   : > { %1566 = vmatprep.mubr.bf16.mxu0 %v392_v47 }
 0x132   : > { %1567 = vmatmul.mubr.bf16.gmra.mxu0 %v393_v52 }
 0x133   : > { %1570 = vmatprep.mubr.bf16.mxu0 %v394_v53 }
 0x13a   : > { %1571 = vmatmul.mubr.bf16.gmra.mxu0 %v395_v56 }
 0x1c2   : > { %v2499_v1 = vpop.f32.mrf.mxu0 }
 0x1c3   : > { %v655_v2 = vmul.f32 0.035677407, %v2499_v1  ;;  %v623_v57 = vmul.f32 0.5, %v2499_v1 }
 0x1c4   : > { %v2502_v3 = vpop.f32.mrf.mxu0 }
 0x1c5   : > { %v687_v4 = vmul.f32 %v2499_v1, %v655_v2  ;;  %v653_v5 = vmul.f32 0.035677407, %v2502_v3  ;;  %v621_v60 = vmul.f32 0.5, %v2502_v3 }
 0x1c6   : > { %v2506_v6 = vpop.f32.mrf.mxu0 }
 0x1c7   : > { %v719_v7 = vadd.f32 0.7978846, %v687_v4  ;;  %v685_v8 = vmul.f32 %v653_v5, %v2502_v3  ;;  %v656_v9 = vmul.f32 0.035677407, %v2506_v6  ;;  %v624_v62 = vmul.f32 0.5, %v2506_v6 }
 0x1c8   : > { %v2510_v10 = vpop.f32.mrf.mxu0 }
 0x1c9   : > { %v717_v11 = vadd.f32 0.7978846, %v685_v8  ;;  %v688_v12 = vmul.f32 %v2506_v6, %v656_v9  ;;  %v654_v13 = vmul.f32 0.035677407, %v2510_v10  ;;  %v751_v14 = vmul.f32 %v2499_v1, %v719_v7 }
 0x1ca   : > { %v2515_v15 = vpop.f32.mrf.mxu0  ;;  %v622_v1 = vmul.f32 0.5, %v2510_v10 }
 0x1cb   : > { %v749_v16 = vmul.f32 %v717_v11, %v2502_v3  ;;  %v720_v17 = vadd.f32 0.7978846, %v688_v12  ;;  %v686_v18 = vmul.f32 %v654_v13, %v2510_v10  ;;  %v659_v19 = vmul.f32 0.035677407, %v2515_v15 }
 0x1cc   : > { %v2520_v20 = vpop.f32.mrf.mxu0  ;;  %v2568_v11 = vmul.f32 0.5, %v2515_v15 }
 0x1cd   : > { %1790 = vtanh.f32 %v749_v16  ;;  %v752_v21 = vmul.f32 %v2506_v6, %v720_v17  ;;  %v718_v22 = vadd.f32 0.7978846, %v686_v18  ;;  %v691_v23 = vmul.f32 %v2515_v15, %v659_v19 }
 0x1ce   : > { %1792 = vtanh.f32 %v751_v14  ;;  %v657_v24 = vmul.f32 0.035677407, %v2520_v20  ;;  %v2525_v25 = vpop.f32.mrf.mxu0  ;;  %v625_v13 = vmul.f32 0.5, %v2520_v20 }
 0x1cf   : > { %1794 = vtanh.f32 %v752_v21  ;;  %v750_v26 = vmul.f32 %v718_v22, %v2510_v10  ;;  %v660_v27 = vmul.f32 0.035677407, %v2525_v25  ;;  %v723_v28 = vadd.f32 0.7978846, %v691_v23 }
 0x1d0   : > { %v689_v29 = vmul.f32 %v657_v24, %v2520_v20  ;;  %v2530_v30 = vpop.f32.mrf.mxu0 }
 0x1d1   : > { %1796 = vtanh.f32 %v750_v26  ;;  %v692_v31 = vmul.f32 %v2525_v25, %v660_v27  ;;  %v658_v32 = vmul.f32 0.035677407, %v2530_v30  ;;  %v755_v35 = vmul.f32 %v2515_v15, %v723_v28 }
 0x1d2   : > { %v721_v33 = vadd.f32 0.7978846, %v689_v29  ;;  %v2534_v34 = vpop.f32.mrf.mxu0 }
 0x1d3   : > { %v724_v36 = vadd.f32 0.7978846, %v692_v31  ;;  %v690_v37 = vmul.f32 %v658_v32, %v2530_v30  ;;  %v663_v38 = vmul.f32 0.035677407, %v2534_v34  ;;  %v628_v31 = vmul.f32 0.5, %v2525_v25 }
 0x1d4   : > { %v753_v39 = vmul.f32 %v721_v33, %v2520_v20  ;;  %v2540_v40 = vpop.f32.mrf.mxu0  ;;  %v626_v32 = vmul.f32 0.5, %v2530_v30 }
 0x1d5   : > { %v756_v41 = vmul.f32 %v2525_v25, %v724_v36  ;;  %v722_v42 = vadd.f32 0.7978846, %v690_v37  ;;  %v695_v43 = vmul.f32 %v2534_v34, %v663_v38  ;;  %v661_v44 = vmul.f32 0.035677407, %v2540_v40 }
 0x1d6   : > { %1798 = vtanh.f32 %v753_v39  ;;  %v2545_v45 = vpop.f32.mrf.mxu0 }
 0x1d7   : > { %1800 = vtanh.f32 %v755_v35  ;;  %v754_v46 = vmul.f32 %v722_v42, %v2530_v30  ;;  %v727_v47 = vadd.f32 0.7978846, %v695_v43  ;;  %v693_v48 = vmul.f32 %v661_v44, %v2540_v40 }
 0x1d8   : > { %1802 = vtanh.f32 %v756_v41  ;;  %v664_v49 = vmul.f32 0.035677407, %v2545_v45  ;;  %v2550_v50 = vpop.f32.mrf.mxu0 }
 0x1d9   : > { %1804 = vtanh.f32 %v754_v46  ;;  %v662_v51 = vmul.f32 0.035677407, %v2550_v50  ;;  %v725_v53 = vadd.f32 0.7978846, %v693_v48  ;;  %v759_v63 = vmul.f32 %v2534_v34, %v727_v47 }
 0x1da   : > { %v1791_v52 = vpop.eup %1790  ;;  %v696_v54 = vmul.f32 %v2545_v45, %v664_v49  ;;  %v2554_v55 = vpop.f32.mrf.mxu0  ;;  %v2594_v47 = vmul.f32 0.5, %v2534_v34 }
 0x1db   : > { %v1793_v56 = vpop.eup %1792  ;;  %v694_v58 = vmul.f32 %v662_v51, %v2550_v50  ;;  %v667_v59 = vmul.f32 0.035677407, %v2554_v55  ;;  %v757_v0 = vmul.f32 %v725_v53, %v2540_v40  ;;  %v813_v8 = vadd.f32 1.0, %v1791_v52 }
 0x1dc   : > { %v1795_v61 = vpop.eup %1794  ;;  %v728_v2 = vadd.f32 0.7978846, %v696_v54  ;;  %v2563_v4 = vpop.f32.mrf.mxu0  ;;  %v815_v17 = vadd.f32 1.0, %v1793_v56 }
 0x1dd   : > { %v726_v5 = vadd.f32 0.7978846, %v694_v58  ;;  %v665_v7 = vmul.f32 0.035677407, %v2563_v4  ;;  %1806 = vtanh.f32 %v757_v0  ;;  %v699_v3 = vmul.f32 %v2554_v55, %v667_v59 }
 0x1de   : > { %v1797_v9 = vpop.eup %1796  ;;  %v2571_v6 = vpop.f32.mrf.mxu0  ;;  %v816_v12 = vadd.f32 1.0, %v1795_v61  ;;  %1808 = vtanh.f32 %v759_v63  ;;  %v760_v10 = vmul.f32 %v2545_v45, %v728_v2  ;;  %v845_v22 = vmul.f32 %v813_v8, %v621_v60 }
 0x1df   : > { %v758_v14 = vmul.f32 %v726_v5, %v2550_v50  ;;  %v697_v16 = vmul.f32 %v665_v7, %v2563_v4  ;;  %v668_v18 = vmul.f32 0.035677407, %v2571_v6  ;;  %v814_v19 = vadd.f32 1.0, %v1797_v9 }
 0x1e0   : > { %v2578_v15 = vpop.f32.mrf.mxu0  ;;  %v848_v23 = vmul.f32 %v816_v12, %v624_v62  ;;  %v731_v24 = vadd.f32 0.7978846, %v699_v3  ;;  %v847_v35 = vmul.f32 %v815_v17, %v623_v57  ;;  %v629_v61 = vmul.f32 0.5, %v2540_v40 }
 0x1e1   : > { %1810 = vtanh.f32 %v758_v14  ;;  %v729_v21 = vadd.f32 0.7978846, %v697_v16  ;;  %v700_v20 = vmul.f32 %v2571_v6, %v668_v18  ;;  %v666_v26 = vmul.f32 0.035677407, %v2578_v15 }
 0x1e2   : > { %v2582_v27 = vpop.f32.mrf.mxu0  ;;  %v846_v28 = vmul.f32 %v814_v19, %v622_v1  ;;  %1812 = vtanh.f32 %v760_v10  ;;  %v910_v46 = vpack.c.bf16 %v848_v23, %v847_v35  ;;  %v763_v48 = vmul.f32 %v2554_v55, %v731_v24 }
 0x1e3   : > { %v1799_v29 = vpop.eup %1798  ;;  %v671_v33 = vmul.f32 0.035677407, %v2582_v27  ;;  %v761_v37 = vmul.f32 %v729_v21, %v2563_v4  ;;  %v698_v38 = vmul.f32 %v666_v26, %v2578_v15  ;;  %v732_v43 = vadd.f32 0.7978846, %v700_v20 }
 0x1e4   : > { %v1801_v36 = vpop.eup %1800  ;;  %v2589_v39 = vpop.f32.mrf.mxu0  ;;  %v909_v41 = vpack.c.bf16 %v846_v28, %v845_v22  ;;  %v817_v52 = vadd.f32 1.0, %v1799_v29  ;;  %v632_v28 = vmul.f32 0.5, %v2545_v45  ;;  %v630_v29 = vmul.f32 0.5, %v2550_v50 }
 0x1e5   : > { %v1803_v42 = vpop.eup %1802  ;;  %v703_v44 = vmul.f32 %v2582_v27, %v671_v33  ;;  %v669_v25 = vmul.f32 0.035677407, %v2589_v39  ;;  %v730_v49 = vadd.f32 0.7978846, %v698_v38  ;;  %v819_v57 = vadd.f32 1.0, %v1801_v36 }
 0x1e6   : > { %v1805_v30 = vpop.eup %1804  ;;  %1590 = vmatprep.mubr.bf16.mxu1 %v909_v41  ;;  %v2597_v51 = vpop.f32.mrf.mxu0  ;;  %1814 = vtanh.f32 %v761_v37  ;;  %v820_v60 = vadd.f32 1.0, %v1803_v42  ;;  %v764_v62 = vmul.f32 %v2571_v6, %v732_v43  ;;  %v849_v7 = vmul.f32 %v817_v52, %v625_v13 }
 0x1e7   : > { %v735_v53 = vadd.f32 0.7978846, %v703_v44  ;;  %v701_v54 = vmul.f32 %v669_v25, %v2589_v39  ;;  %v672_v56 = vmul.f32 0.035677407, %v2597_v51  ;;  %1591 = vmatmul.mubr.bf16.vlgmr.msra.gmra.mxu1 %v910_v46  ;;  %v762_v58 = vmul.f32 %v730_v49, %v2578_v15 }
 0x1e8   : > { %v2602_v59 = vpop.f32.mrf.mxu0  ;;  %v818_v34 = vadd.f32 1.0, %v1805_v30  ;;  %v851_v12 = vmul.f32 %v819_v57, %v2568_v11  ;;  %v852_v10 = vmul.f32 %v820_v60, %v628_v31 }
 0x1e9   : > { %v733_v63 = vadd.f32 0.7978846, %v701_v54  ;;  %v704_v0 = vmul.f32 %v2597_v51, %v672_v56  ;;  %1816 = vtanh.f32 %v762_v58  ;;  %v670_v2 = vmul.f32 0.035677407, %v2602_v59 }
 0x1ea   : > { %v2608_v5 = vpop.f32.mrf.mxu0  ;;  %v850_v1 = vmul.f32 %v818_v34, %v626_v32  ;;  %v1807_v8 = vpop.eup %1806  ;;  %1818 = vtanh.f32 %v763_v48  ;;  %v767_v9 = vmul.f32 %v2582_v27, %v735_v53  ;;  %v912_v20 = vpack.c.bf16 %v852_v10, %v851_v12 }
 0x1eb   : > { %v736_v3 = vadd.f32 0.7978846, %v704_v0  ;;  %v702_v40 = vmul.f32 %v670_v2, %v2602_v59  ;;  %v675_v14 = vmul.f32 0.035677407, %v2608_v5  ;;  %v1809_v18 = vpop.eup %1808  ;;  %1820 = vtanh.f32 %v764_v62 }
 0x1ec   : > { %v2614_v16 = vpop.f32.mrf.mxu0  ;;  %v911_v17 = vpack.c.bf16 %v850_v1, %v849_v7  ;;  %v765_v13 = vmul.f32 %v733_v63, %v2589_v39  ;;  %v821_v26 = vadd.f32 1.0, %v1807_v8  ;;  %1822 = vtanh.f32 %v767_v9 }
 0x1ed   : > { %v768_v19 = vmul.f32 %v2597_v51, %v736_v3  ;;  %v673_v21 = vmul.f32 0.035677407, %v2614_v16  ;;  %v734_v23 = vadd.f32 0.7978846, %v702_v40  ;;  %v707_v11 = vmul.f32 %v2608_v5, %v675_v14 }
 0x1ee   : > { %v1811_v22 = vpop.eup %1810  ;;  %1594 = vmatprep.mubr.bf16.mxu1 %v911_v17  ;;  %v2620_v24 = vpop.f32.mrf.mxu0  ;;  %1824 = vtanh.f32 %v765_v13  ;;  %v853_v43 = vmul.f32 %v821_v26, %v629_v61  ;;  %v823_v25 = vadd.f32 1.0, %v1809_v18  ;;  %v635_v58 = vmul.f32 0.5, %v2554_v55 }
 0x1ef   : > { %v705_v31 = vmul.f32 %v673_v21, %v2614_v16  ;;  %v676_v32 = vmul.f32 0.035677407, %v2620_v24  ;;  %v766_v33 = vmul.f32 %v734_v23, %v2602_v59  ;;  %v739_v35 = vadd.f32 0.7978846, %v707_v11  ;;  %1595 = vmatmul.mubr.bf16.gmra.mxu1 %v912_v20  ;;  %v1813_v38 = vpop.eup %1812 }
 0x1f0   : > { %v2627_v36 = vpop.f32.mrf.mxu0  ;;  %v822_v37 = vadd.f32 1.0, %v1811_v22  ;;  %1826 = vtanh.f32 %v768_v19  ;;  %v824_v56 = vadd.f32 1.0, %v1813_v38  ;;  %v855_v63 = vmul.f32 %v823_v25, %v2594_v47 }
 0x1f1   : > { %v737_v41 = vadd.f32 0.7978846, %v705_v31  ;;  %v708_v42 = vmul.f32 %v2620_v24, %v676_v32  ;;  %v674_v45 = vmul.f32 0.035677407, %v2627_v36  ;;  %1828 = vtanh.f32 %v766_v33 }
 0x1f2   : > { %v2631_v50 = vpop.f32.mrf.mxu0  ;;  %v854_v44 = vmul.f32 %v822_v37, %v630_v29  ;;  %v771_v49 = vmul.f32 %v2608_v5, %v739_v35  ;;  %v856_v0 = vmul.f32 %v824_v56, %v632_v28  ;;  %v633_v7 = vmul.f32 0.5, %v2563_v4 }
 0x1f3   : > { %v769_v46 = vmul.f32 %v737_v41, %v2614_v16  ;;  %v740_v30 = vadd.f32 0.7978846, %v708_v42  ;;  %v706_v48 = vmul.f32 %v674_v45, %v2627_v36  ;;  %v679_v52 = vmul.f32 0.035677407, %v2631_v50  ;;  %v1815_v57 = vpop.eup %1814 }
 0x1f4   : > { %v2637_v53 = vpop.f32.mrf.mxu0  ;;  %v913_v54 = vpack.c.bf16 %v854_v44, %v853_v43  ;;  %v914_v12 = vpack.c.bf16 %v856_v0, %v855_v63  ;;  %v825_v14 = vadd.f32 1.0, %v1815_v57  ;;  %v636_v47 = vmul.f32 0.5, %v2571_v6 }
 0x1f5   : > { %1830 = vtanh.f32 %v769_v46  ;;  %v738_v34 = vadd.f32 0.7978846, %v706_v48  ;;  %v772_v60 = vmul.f32 %v2620_v24, %v740_v30  ;;  %v677_v61 = vmul.f32 0.035677407, %v2637_v53 }
 0x1f6   : > { %1598 = vmatprep.mubr.bf16.mxu1 %v913_v54  ;;  %v2642_v62 = vpop.f32.mrf.mxu0  ;;  %v1817_v2 = vpop.eup %1816  ;;  %v711_v8 = vmul.f32 %v2631_v50, %v679_v52  ;;  %1832 = vtanh.f32 %v771_v49  ;;  %v634_v18 = vmul.f32 0.5, %v2578_v15  ;;  %v857_v28 = vmul.f32 %v825_v14, %v633_v7 }
 0x1f7   : > { %v770_v1 = vmul.f32 %v738_v34, %v2627_v36  ;;  %v680_v55 = vmul.f32 0.035677407, %v2642_v62  ;;  %v1819_v9 = vpop.eup %1818  ;;  %v709_v3 = vmul.f32 %v677_v61, %v2637_v53  ;;  %1599 = vmatmul.mubr.bf16.gmra.mxu1 %v914_v12  ;;  %v826_v21 = vadd.f32 1.0, %v1817_v2 }
 0x1f8   : > { %v2650_v40 = vpop.f32.mrf.mxu0  ;;  %v1821_v10 = vpop.eup %1820  ;;  %v743_v22 = vadd.f32 0.7978846, %v711_v8  ;;  %v827_v31 = vadd.f32 1.0, %v1819_v9  ;;  %v639_v32 = vmul.f32 0.5, %v2582_v27  ;;  %v637_v33 = vmul.f32 0.5, %v2589_v39 }
 0x1f9   : > { %1834 = vtanh.f32 %v770_v1  ;;  %v712_v17 = vmul.f32 %v2642_v62, %v680_v55  ;;  %v678_v4 = vmul.f32 0.035677407, %v2650_v40  ;;  %v741_v13 = vadd.f32 0.7978846, %v709_v3  ;;  %v1823_v15 = vpop.eup %1822 }
 0x1fa   : > { %1836 = vtanh.f32 %v772_v60  ;;  %v2656_v19 = vpop.f32.mrf.mxu0  ;;  %v858_v29 = vmul.f32 %v826_v21, %v634_v18  ;;  %v828_v43 = vadd.f32 1.0, %v1821_v10  ;;  %v775_v25 = vmul.f32 %v2631_v50, %v743_v22 }
 0x1fb   : > { %v744_v23 = vadd.f32 0.7978846, %v712_v17  ;;  %v710_v11 = vmul.f32 %v678_v4, %v2650_v40  ;;  %v683_v6 = vmul.f32 0.035677407, %v2656_v19  ;;  %v773_v20 = vmul.f32 %v741_v13, %v2637_v53  ;;  %v1825_v38 = vpop.eup %1824 }
 0x1fc   : > { %v2661_v26 = vpop.f32.mrf.mxu0  ;;  %v915_v42 = vpack.c.bf16 %v858_v29, %v857_v28  ;;  %v859_v49 = vmul.f32 %v827_v31, %v635_v58  ;;  %v860_v52 = vmul.f32 %v828_v43, %v636_v47  ;;  %v640_v56 = vmul.f32 0.5, %v2597_v51 }
 0x1fd   : > { %v776_v35 = vmul.f32 %v2642_v62, %v744_v23  ;;  %v742_v37 = vadd.f32 0.7978846, %v710_v11  ;;  %1838 = vtanh.f32 %v773_v20  ;;  %v681_v41 = vmul.f32 0.035677407, %v2661_v26  ;;  %v1827_v44 = vpop.eup %1826 }
 0x1fe   : > { %v2667_v45 = vpop.f32.mrf.mxu0  ;;  %v715_v27 = vmul.f32 %v2656_v19, %v683_v6  ;;  %v1829_v39 = vpop.eup %1828  ;;  %1602 = vmatprep.mubr.bf16.mxu1 %v915_v42  ;;  %v638_v57 = vmul.f32 0.5, %v2602_v59  ;;  %v916_v0 = vpack.c.bf16 %v860_v52, %v859_v49  ;;  %v829_v2 = vadd.f32 1.0, %v1825_v38 }
 0x1ff   : > { %1840 = vtanh.f32 %v776_v35  ;;  %v774_v46 = vmul.f32 %v742_v37, %v2650_v40  ;;  %v713_v30 = vmul.f32 %v681_v41, %v2661_v26  ;;  %v684_v48 = vmul.f32 0.035677407, %v2667_v45 }
 0x200   : > { %v2674_v54 = vpop.f32.mrf.mxu0  ;;  %v747_v7 = vadd.f32 0.7978846, %v715_v27  ;;  %v830_v1 = vadd.f32 1.0, %v1829_v39  ;;  %1603 = vmatmul.mubr.bf16.gmra.mxu1 %v916_v0  ;;  %v831_v51 = vadd.f32 1.0, %v1823_v15  ;;  %v832_v59 = vadd.f32 1.0, %v1827_v44 }
 0x201   : > { %1842 = vtanh.f32 %v774_v46  ;;  %v682_v34 = vmul.f32 0.035677407, %v2674_v54  ;;  %v745_v61 = vadd.f32 0.7978846, %v713_v30  ;;  %v716_v63 = vmul.f32 %v2667_v45, %v684_v48 }
 0x202   : > { %v1831_v60 = vpop.eup %1830  ;;  %1844 = vtanh.f32 %v775_v25  ;;  %v861_v12 = vmul.f32 %v829_v2, %v637_v33  ;;  %v862_v14 = vmul.f32 %v830_v1, %v638_v57  ;;  %v641_v4 = vmul.f32 0.5, %v2614_v16 }
 0x203   : > { %v714_v58 = vmul.f32 %v682_v34, %v2674_v54  ;;  %v777_v8 = vmul.f32 %v745_v61, %v2661_v26  ;;  %v748_v55 = vadd.f32 0.7978846, %v716_v63  ;;  %v1833_v9 = vpop.eup %1832  ;;  %v833_v47 = vadd.f32 1.0, %v1831_v60 }
 0x204   : > { %v864_v18 = vmul.f32 %v832_v59, %v640_v56  ;;  %v642_v21 = vmul.f32 0.5, %v2627_v36  ;;  %v917_v23 = vpack.c.bf16 %v862_v14, %v861_v12  ;;  %v779_v6 = vmul.f32 %v2656_v19, %v747_v7  ;;  %v877_v14 = vld [vmem:[#allocation2 + $0xb0] sm:$0xff] }
 0x205   : > { %v746_v3 = vadd.f32 0.7978846, %v714_v58  ;;  %1846 = vtanh.f32 %v777_v8  ;;  %v780_v10 = vmul.f32 %v2667_v45, %v748_v55  ;;  %v863_v20 = vmul.f32 %v831_v51, %v639_v32 }
 0x206   : > { %v1835_v17 = vpop.eup %1834  ;;  %1606 = vmatprep.mubr.bf16.mxu1 %v917_v23  ;;  %v865_v28 = vmul.f32 %v833_v47, %v641_v4  ;;  %v644_v37 = vmul.f32 0.5, %v2620_v24  ;;  %v835_v36 = vadd.f32 1.0, %v1833_v9  ;;  %v643_v32 = vmul.f32 0.5, %v2608_v5  ;;  %v880_v4 = vld [vmem:[#allocation2 + $0x18] sm:$0xff] }
 0x207   : > { %v1837_v13 = vpop.eup %1836  ;;  %v778_v22 = vmul.f32 %v746_v3, %v2674_v54  ;;  %v834_v11 = vadd.f32 1.0, %v1835_v17  ;;  %v918_v16 = vpack.c.bf16 %v864_v18, %v863_v20  ;;  %v645_v43 = vmul.f32 0.5, %v2637_v53 }
 0x208   : > { %v836_v31 = vadd.f32 1.0, %v1837_v13  ;;  %v646_v44 = vmul.f32 0.5, %v2650_v40  ;;  %v867_v27 = vmul.f32 %v835_v36, %v643_v32  ;;  %v648_v56 = vmul.f32 0.5, %v2642_v62  ;;  %v878_v13 = vld [vmem:[#allocation2] sm:$0xff] }
 0x209   : > { %1848 = vtanh.f32 %v778_v22  ;;  %v866_v29 = vmul.f32 %v834_v11, %v642_v21  ;;  %1607 = vmatmul.mubr.bf16.gmra.mxu1 %v918_v16  ;;  %v647_v53 = vmul.f32 0.5, %v2631_v50  ;;  %v649_v61 = vmul.f32 0.5, %v2661_v26  ;;  %v881_v11 = vld [vmem:[#allocation2 + $0x50] sm:$0xff] }
 0x20a   : > { %1850 = vtanh.f32 %v780_v10  ;;  %v1839_v15 = vpop.eup %1838  ;;  %v868_v42 = vmul.f32 %v836_v31, %v644_v37  ;;  %v650_v63 = vmul.f32 0.5, %v2674_v54  ;;  %v652_v51 = vmul.f32 0.5, %v2667_v45  ;;  %v879_v54 = vld [vmem:[#allocation2 + $0xd8] sm:$0xff]  ;;  %v882_v31 = vld [vmem:[#allocation2 + $0x68] sm:$0xff] }
 0x20b   : > { %v919_v33 = vpack.c.bf16 %v866_v29, %v865_v28  ;;  %1852 = vtanh.f32 %v779_v6  ;;  %v837_v38 = vadd.f32 1.0, %v1839_v15  ;;  %v651_v50 = vmul.f32 0.5, %v2656_v19  ;;  %v883_v19 = vld [vmem:[#allocation2 + $0x30] sm:$0xff]  ;;  %v884_v28 = vld [vmem:[#allocation2 + $0x48] sm:$0xff] }
 0x20c   : > { %v1841_v35 = vpop.eup %1840  ;;  %v920_v48 = vpack.c.bf16 %v868_v42, %v867_v27  ;;  %v887_v37 = vld [vmem:[#allocation2 + $0xe8] sm:$0xff]  ;;  %v888_v42 = vld [vmem:[#allocation2 + $0xb8] sm:$0xff] }
 0x20d   : > { %1610 = vmatprep.mubr.bf16.mxu1 %v919_v33  ;;  %v869_v39 = vmul.f32 %v837_v38, %v645_v43  ;;  %v840_v24 = vadd.f32 1.0, %v1841_v35  ;;  %v885_v38 = vld [vmem:[#allocation2 + $0x80] sm:$0xff] }
 0x20e   : > { %v1843_v41 = vpop.eup %1842 }
 0x20f   : > { %v838_v25 = vadd.f32 1.0, %v1843_v41  ;;  %v1845_v46 = vpop.eup %1844  ;;  %v872_v60 = vmul.f32 %v840_v24, %v648_v56  ;;  %v889_v24 = vld [vmem:[#allocation2 + $0x60] sm:$0xff]  ;;  %v892_v56 = vld [vmem:[#allocation2 + $0x78] sm:$0xff] }
 0x210   : > { %v839_v57 = vadd.f32 1.0, %v1845_v46 }
 0x211   : > { %v870_v30 = vmul.f32 %v838_v25, %v646_v44  ;;  %1611 = vmatmul.mubr.bf16.gmra.mxu1 %v920_v48  ;;  %v886_v25 = vld [vmem:[#allocation2 + $0x88] sm:$0xff] }
 0x212   : > { %v1847_v49 = vpop.eup %1846  ;;  %v871_v2 = vmul.f32 %v839_v57, %v647_v53 }
 0x213   : > { %v921_v52 = vpack.c.bf16 %v870_v30, %v869_v39  ;;  %v841_v5 = vadd.f32 1.0, %v1847_v49  ;;  %v891_v30 = vld [vmem:[#allocation2 + $0x8] sm:$0xff] }
 0x214   : > { %v922_v8 = vpack.c.bf16 %v872_v60, %v871_v2 }
 0x215   : > { %1614 = vmatprep.mubr.bf16.mxu1 %v921_v52  ;;  %v873_v1 = vmul.f32 %v841_v5, %v649_v61 }
 0x216   : > { %v1849_v34 = vpop.eup %1848 }
 0x217   : > { %v1851_v40 = vpop.eup %1850  ;;  %v842_v0 = vadd.f32 1.0, %v1849_v34  ;;  %v890_v34 = vld [vmem:[#allocation2 + $0xf0] sm:$0xff] }
 0x218   : > { %v1853_v7 = vpop.eup %1852  ;;  %v844_v62 = vadd.f32 1.0, %v1851_v40  ;;  %v895_v40 = vld [vmem:[#allocation2 + $0x40] sm:$0xff] }
 0x219   : > { %v874_v58 = vmul.f32 %v842_v0, %v650_v63  ;;  %1615 = vmatmul.mubr.bf16.gmra.mxu1 %v922_v8  ;;  %v843_v59 = vadd.f32 1.0, %v1853_v7  ;;  %v893_v0 = vld [vmem:[#allocation2 + $0x38] sm:$0xff] }
 0x21a   : > { %v876_v9 = vmul.f32 %v844_v62, %v652_v51  ;;  %v894_v62 = vld [vmem:[#allocation2 + $0x58] sm:$0xff] }
 0x21b   : > { %v923_v55 = vpack.c.bf16 %v874_v58, %v873_v1  ;;  %v875_v3 = vmul.f32 %v843_v59, %v651_v50  ;;  %v896_v58 = vld [vmem:[#allocation2 + $0xc8] sm:$0xff]  ;;  %v899_v59 = vld [vmem:[#allocation2 + $0x70] sm:$0xff] }
 0x21d   : > { %1618 = vmatprep.mubr.bf16.mxu1 %v923_v55  ;;  %v924_v26 = vpack.c.bf16 %v876_v9, %v875_v3  ;;  %v897_v3 = vld [vmem:[#allocation2 + $0xe0] sm:$0xff] }
 0x221   : > { %1619 = vmatmul.mubr.bf16.gmra.mxu1 %v924_v26 }
 0x2a7   : > { %v1592_v12 = vpop.f32.mrf.mxu1 }
 0x2a8   : > { %v1152_v47 = vadd.f32 %v1592_v12, %v879_v54  ;;  %v900_v12 = vld [vmem:[#allocation2 + $0xc0] sm:$0xff] }
 0x2a9   : > { %v1023_v17 = vpop.f32.mrf.mxu1 }
 0x2aa   : > { %1184 = vst [vmem:[#allocation2 + $0xd8] sm:$0xff] %v1152_v47  ;;  %v1150_v10 = vadd.f32 %v1023_v17, %v877_v14  ;;  %v898_v17 = vld [vmem:[#allocation2 + $0x90] sm:$0xff] }
 0x2ab   : > { %v1593_v18 = vpop.f32.mrf.mxu1 }
 0x2ac   : > { %1182 = vst [vmem:[#allocation2 + $0xb0] sm:$0xff] %v1150_v10  ;;  %v1153_v45 = vadd.f32 %v1593_v18, %v880_v4  ;;  %v903_v18 = vld [vmem:[#allocation2 + $0x10] sm:$0xff] }
 0x2ad   : > { %v1026_v21 = vpop.f32.mrf.mxu1 }
 0x2ae   : > { %1185 = vst [vmem:[#allocation2 + $0x18] sm:$0xff] %v1153_v45  ;;  %v1151_v22 = vadd.f32 %v1026_v21, %v878_v13  ;;  %v901_v21 = vld [vmem:[#allocation2 + $0xa8] sm:$0xff] }
 0x2af   : > { %v1596_v23 = vpop.f32.mrf.mxu1 }
 0x2b0   : > { %1183 = vst [vmem:[#allocation2] sm:$0xff] %v1151_v22  ;;  %v1156_v6 = vadd.f32 %v1596_v23, %v883_v19  ;;  %v904_v23 = vld [vmem:[#allocation2 + $0x28] sm:$0xff] }
 0x2b1   : > { %v1039_v20 = vpop.f32.mrf.mxu1 }
 0x2b2   : > { %1188 = vst [vmem:[#allocation2 + $0x30] sm:$0xff] %v1156_v6  ;;  %v1154_v29 = vadd.f32 %v1039_v20, %v881_v11  ;;  %v902_v20 = vld [vmem:[#allocation2 + $0xd0] sm:$0xff] }
 0x2b3   : > { %v1597_v16 = vpop.f32.mrf.mxu1 }
 0x2b4   : > { %1186 = vst [vmem:[#allocation2 + $0x50] sm:$0xff] %v1154_v29  ;;  %v1157_v15 = vadd.f32 %v1597_v16, %v884_v28  ;;  %v907_v16 = vld [vmem:[#allocation2 + $0x20] sm:$0xff] }
 0x2b5   : > { %v1042_v33 = vpop.f32.mrf.mxu1 }
 0x2b6   : > { %1189 = vst [vmem:[#allocation2 + $0x48] sm:$0xff] %v1157_v15  ;;  %v1155_v35 = vadd.f32 %v1042_v33, %v882_v31  ;;  %v905_v33 = vld [vmem:[#allocation2 + $0xa0] sm:$0xff] }
 0x2b7   : > { %v1600_v36 = vpop.f32.mrf.mxu1 }
 0x2b8   : > { %1187 = vst [vmem:[#allocation2 + $0x68] sm:$0xff] %v1155_v35  ;;  %v1160_v41 = vadd.f32 %v1600_v36, %v887_v37  ;;  %v908_v36 = vld [vmem:[#allocation2 + $0x98] sm:$0xff] }
 0x2b9   : > { %v1055_v32 = vpop.f32.mrf.mxu1 }
 0x2ba   : > { %1192 = vst [vmem:[#allocation2 + $0xe8] sm:$0xff] %v1160_v41  ;;  %v1158_v43 = vadd.f32 %v1055_v32, %v885_v38  ;;  %v906_v32 = vld [vmem:[#allocation2 + $0xf8] sm:$0xff] }
 0x2bb   : > { %v1601_v44 = vpop.f32.mrf.mxu1 }
 0x2bc   : > { %1190 = vst [vmem:[#allocation2 + $0x80] sm:$0xff] %v1158_v43  ;;  %v1161_v46 = vadd.f32 %v1601_v44, %v888_v42 }
 0x2bd   : > { %v1058_v27 = vpop.f32.mrf.mxu1 }
 0x2be   : > { %1193 = vst [vmem:[#allocation2 + $0xb8] sm:$0xff] %v1161_v46  ;;  %v1159_v39 = vadd.f32 %v1058_v27, %v886_v25 }
 0x2c0   : > { %1191 = vst [vmem:[#allocation2 + $0x88] sm:$0xff] %v1159_v39  ;;  %v1604_v48 = vpop.f32.mrf.mxu1 }
 0x2c1   : > { %v1164_v49 = vadd.f32 %v1604_v48, %v891_v30 }
 0x2c2   : > { %v1071_v52 = vpop.f32.mrf.mxu1 }
 0x2c3   : > { %1196 = vst [vmem:[#allocation2 + $0x8] sm:$0xff] %v1164_v49  ;;  %v1162_v57 = vadd.f32 %v1071_v52, %v889_v24 }
 0x2c4   : > { %v1605_v5 = vpop.f32.mrf.mxu1 }
 0x2c5   : > { %1194 = vst [vmem:[#allocation2 + $0x60] sm:$0xff] %v1162_v57  ;;  %v1165_v53 = vadd.f32 %v1605_v5, %v892_v56 }
 0x2c6   : > { %v1074_v60 = vpop.f32.mrf.mxu1 }
 0x2c7   : > { %1197 = vst [vmem:[#allocation2 + $0x78] sm:$0xff] %v1165_v53  ;;  %v1163_v61 = vadd.f32 %v1074_v60, %v890_v34 }
 0x2c9   : > { %v1608_v63 = vpop.f32.mrf.mxu1  ;;  %1195 = vst [vmem:[#allocation2 + $0xf0] sm:$0xff] %v1163_v61 }
 0x2ca   : > { %v1168_v2 = vadd.f32 %v1608_v63, %v895_v40 }
 0x2cb   : > { %v1087_v7 = vpop.f32.mrf.mxu1 }
 0x2cc   : > { %1200 = vst [vmem:[#allocation2 + $0x40] sm:$0xff] %v1168_v2  ;;  %v1166_v1 = vadd.f32 %v1087_v7, %v893_v0 }
 0x2cd   : > { %v1609_v8 = vpop.f32.mrf.mxu1 }
 0x2ce   : > { %1198 = vst [vmem:[#allocation2 + $0x38] sm:$0xff] %v1166_v1  ;;  %v1169_v55 = vadd.f32 %v1609_v8, %v896_v58 }
 0x2cf   : > { %v1090_v51 = vpop.f32.mrf.mxu1 }
 0x2d0   : > { %1201 = vst [vmem:[#allocation2 + $0xc8] sm:$0xff] %v1169_v55  ;;  %v1167_v50 = vadd.f32 %v1090_v51, %v894_v62 }
 0x2d1   : > { %v1612_v9 = vpop.f32.mrf.mxu1 }
 0x2d2   : > { %1199 = vst [vmem:[#allocation2 + $0x58] sm:$0xff] %v1167_v50  ;;  %v1172_v26 = vadd.f32 %v1612_v9, %v899_v59 }
 0x2d3   : > { %v1103_v54 = vpop.f32.mrf.mxu1 }
 0x2d4   : > { %1204 = vst [vmem:[#allocation2 + $0x70] sm:$0xff] %v1172_v26  ;;  %v1170_v14 = vadd.f32 %v1103_v54, %v897_v3 }
 0x2d5   : > { %v1613_v47 = vpop.f32.mrf.mxu1 }
 0x2d6   : > { %1202 = vst [vmem:[#allocation2 + $0xe0] sm:$0xff] %v1170_v14  ;;  %v1173_v4 = vadd.f32 %v1613_v47, %v900_v12 }
 0x2d7   : > { %v1106_v10 = vpop.f32.mrf.mxu1 }
 0x2d8   : > { %1205 = vst [vmem:[#allocation2 + $0xc0] sm:$0xff] %v1173_v4  ;;  %v1171_v13 = vadd.f32 %v1106_v10, %v898_v17 }
 0x2d9   : > { %v1616_v45 = vpop.f32.mrf.mxu1 }
 0x2da   : > { %1203 = vst [vmem:[#allocation2 + $0x90] sm:$0xff] %v1171_v13  ;;  %v1176_v22 = vadd.f32 %v1616_v45, %v903_v18 }
 0x2db   : > { %v1119_v19 = vpop.f32.mrf.mxu1 }
 0x2dc   : > { %1208 = vst [vmem:[#allocation2 + $0x10] sm:$0xff] %v1176_v22  ;;  %v1174_v11 = vadd.f32 %v1119_v19, %v901_v21 }
 0x2dd   : > { %v1617_v6 = vpop.f32.mrf.mxu1 }
 0x2de   : > { %1206 = vst [vmem:[#allocation2 + $0xa8] sm:$0xff] %v1174_v11  ;;  %v1177_v28 = vadd.f32 %v1617_v6, %v904_v23 }
 0x2df   : > { %v1122_v29 = vpop.f32.mrf.mxu1 }
 0x2e0   : > { %1209 = vst [vmem:[#allocation2 + $0x28] sm:$0xff] %v1177_v28  ;;  %v1175_v31 = vadd.f32 %v1122_v29, %v902_v20 }
 0x2e1   : > { %v1620_v15 = vpop.f32.mrf.mxu1 }
 0x2e2   : > { %1207 = vst [vmem:[#allocation2 + $0xd0] sm:$0xff] %v1175_v31  ;;  %v1180_v35 = vadd.f32 %v1620_v15, %v907_v16 }
 0x2e3   : > { %v1135_v37 = vpop.f32.mrf.mxu1 }
 0x2e4   : > { %1212 = vst [vmem:[#allocation2 + $0x20] sm:$0xff] %v1180_v35  ;;  %v1178_v38 = vadd.f32 %v1135_v37, %v905_v33 }
 0x2e5   : > { %v1621_v41 = vpop.f32.mrf.mxu1 }
 0x2e6   : > { %1210 = vst [vmem:[#allocation2 + $0xa0] sm:$0xff] %v1178_v38  ;;  %v1181_v42 = vadd.f32 %v1621_v41, %v908_v36  ;;  %1217 = sbr.rel (%p1468_p4) target bundleno = 764 (0x2fc), region = 52 }
 0x2e7   : > { %v1138_v43 = vpop.f32.mrf.mxu1 }
 0x2e8   : > { %1213 = vst [vmem:[#allocation2 + $0x98] sm:$0xff] %v1181_v42  ;;  %v1179_v44 = vadd.f32 %v1138_v43, %v906_v32 }
 0x2ea   : > { %1211 = vst [vmem:[#allocation2 + $0xf8] sm:$0xff] %v1179_v44 }
 0x2eb   : > { %v1218_v25 = vld [vmem:[#allocation2 + $0xb0] sm:$0xff]  ;;  %v1219_v46 = vld [vmem:[#allocation2] sm:$0xff]  ;;  %v1220_v27 = vld [vmem:[#allocation2 + $0xd8] sm:$0xff] }
 0x2ec   : > { %1250 = vst [vmem:[%s2448_s7] sm:$0xff] %v1218_v25  ;;  %1251 = vst [vmem:[%s2448_s7 + $0x8] sm:$0xff] %v1219_v46  ;;  %v1221_v39 = vld [vmem:[#allocation2 + $0x18] sm:$0xff]  ;;  %v1222_v30 = vld [vmem:[#allocation2 + $0x50] sm:$0xff] }
 0x2ed   : > { %1252 = vst [vmem:[%s2448_s7 + $0x10] sm:$0xff] %v1220_v27  ;;  %v1223_v48 = vld [vmem:[#allocation2 + $0x68] sm:$0xff]  ;;  %1253 = vst [vmem:[%s2448_s7 + $0x18] sm:$0xff] %v1221_v39  ;;  %v1224_v24 = vld [vmem:[#allocation2 + $0x30] sm:$0xff] }
 0x2ee   : > { %1254 = vst [vmem:[%s2448_s7 + $0x20] sm:$0xff] %v1222_v30  ;;  %1255 = vst [vmem:[%s2448_s7 + $0x28] sm:$0xff] %v1223_v48  ;;  %v1225_v49 = vld [vmem:[#allocation2 + $0x48] sm:$0xff]  ;;  %v1226_v52 = vld [vmem:[#allocation2 + $0x80] sm:$0xff] }
 0x2ef   : > { %1256 = vst [vmem:[%s2448_s7 + $0x30] sm:$0xff] %v1224_v24  ;;  %1257 = vst [vmem:[%s2448_s7 + $0x38] sm:$0xff] %v1225_v49  ;;  %v1227_v56 = vld [vmem:[#allocation2 + $0x88] sm:$0xff]  ;;  %v1229_v5 = vld [vmem:[#allocation2 + $0xb8] sm:$0xff] }
 0x2f0   : > { %1258 = vst [vmem:[%s2448_s7 + $0x40] sm:$0xff] %v1226_v52  ;;  %v1228_v57 = vld [vmem:[#allocation2 + $0xe8] sm:$0xff]  ;;  %1259 = vst [vmem:[%s2448_s7 + $0x48] sm:$0xff] %v1227_v56  ;;  %v1230_v34 = vld [vmem:[#allocation2 + $0x60] sm:$0xff] }
 0x2f1   : > { %1260 = vst [vmem:[%s2448_s7 + $0x50] sm:$0xff] %v1228_v57  ;;  %1261 = vst [vmem:[%s2448_s7 + $0x58] sm:$0xff] %v1229_v5  ;;  %v1231_v53 = vld [vmem:[#allocation2 + $0xf0] sm:$0xff]  ;;  %v1232_v60 = vld [vmem:[#allocation2 + $0x8] sm:$0xff] }
 0x2f2   : > { %1262 = vst [vmem:[%s2448_s7 + $0x60] sm:$0xff] %v1230_v34  ;;  %1263 = vst [vmem:[%s2448_s7 + $0x68] sm:$0xff] %v1231_v53  ;;  %v1233_v40 = vld [vmem:[#allocation2 + $0x78] sm:$0xff]  ;;  %v1236_v0 = vld [vmem:[#allocation2 + $0x40] sm:$0xff] }
 0x2f3   : > { %1264 = vst [vmem:[%s2448_s7 + $0x70] sm:$0xff] %v1232_v60  ;;  %v1234_v61 = vld [vmem:[#allocation2 + $0x38] sm:$0xff]  ;;  %1265 = vst [vmem:[%s2448_s7 + $0x78] sm:$0xff] %v1233_v40  ;;  %v1237_v2 = vld [vmem:[#allocation2 + $0xc8] sm:$0xff] }
 0x2f4   : > { %v1235_v63 = vld [vmem:[#allocation2 + $0x58] sm:$0xff]  ;;  %1266 = vst [vmem:[%s2448_s7 + $0x80] sm:$0xff] %v1234_v61  ;;  %v1238_v7 = vld [vmem:[#allocation2 + $0xe0] sm:$0xff]  ;;  %1268 = vst [vmem:[%s2448_s7 + $0x90] sm:$0xff] %v1236_v0 }
 0x2f5   : > { %1267 = vst [vmem:[%s2448_s7 + $0x88] sm:$0xff] %v1235_v63  ;;  %1269 = vst [vmem:[%s2448_s7 + $0x98] sm:$0xff] %v1237_v2  ;;  %v1239_v58 = vld [vmem:[#allocation2 + $0x90] sm:$0xff]  ;;  %v1241_v8 = vld [vmem:[#allocation2 + $0xc0] sm:$0xff] }
 0x2f6   : > { %1270 = vst [vmem:[%s2448_s7 + $0xa0] sm:$0xff] %v1238_v7  ;;  %v1240_v1 = vld [vmem:[#allocation2 + $0x70] sm:$0xff]  ;;  %1271 = vst [vmem:[%s2448_s7 + $0xa8] sm:$0xff] %v1239_v58  ;;  %v1242_v62 = vld [vmem:[#allocation2 + $0xa8] sm:$0xff] }
 0x2f7   : > { %1272 = vst [vmem:[%s2448_s7 + $0xb0] sm:$0xff] %v1240_v1  ;;  %1273 = vst [vmem:[%s2448_s7 + $0xb8] sm:$0xff] %v1241_v8  ;;  %v1243_v55 = vld [vmem:[#allocation2 + $0xd0] sm:$0xff]  ;;  %v1245_v59 = vld [vmem:[#allocation2 + $0x28] sm:$0xff] }
 0x2f8   : > { %v1244_v51 = vld [vmem:[#allocation2 + $0x10] sm:$0xff]  ;;  %1274 = vst [vmem:[%s2448_s7 + $0xc0] sm:$0xff] %v1242_v62  ;;  %1275 = vst [vmem:[%s2448_s7 + $0xc8] sm:$0xff] %v1243_v55  ;;  %v1246_v50 = vld [vmem:[#allocation2 + $0xa0] sm:$0xff] }
 0x2f9   : > { %1276 = vst [vmem:[%s2448_s7 + $0xd0] sm:$0xff] %v1244_v51  ;;  %v1247_v9 = vld [vmem:[#allocation2 + $0xf8] sm:$0xff]  ;;  %1277 = vst [vmem:[%s2448_s7 + $0xd8] sm:$0xff] %v1245_v59  ;;  %v1248_v3 = vld [vmem:[#allocation2 + $0x20] sm:$0xff] }
 0x2fa   : > { %1278 = vst [vmem:[%s2448_s7 + $0xe0] sm:$0xff] %v1246_v50  ;;  %1279 = vst [vmem:[%s2448_s7 + $0xe8] sm:$0xff] %v1247_v9  ;;  %v1249_v26 = vld [vmem:[#allocation2 + $0x98] sm:$0xff] }
 0x2fb   : > { %1280 = vst [vmem:[%s2448_s7 + $0xf0] sm:$0xff] %v1248_v3  ;;  %1281 = vst [vmem:[%s2448_s7 + $0xf8] sm:$0xff] %v1249_v26 }
 0x2fc PF: > { %s2888_s13 = sld [smem:[#allocation25_spill]]  ;;  %s1296_s23 = sshll.u32 %s2448_s7, 4  ;;  %s2737_s23 = int_to_ptr.vmem [resolvable:$true] %s1296_s23 }
 0x2fd   : > { %s2889_s20 = sld [smem:[#allocation34_spill]]  ;;  %s1283_s18 = scalar_lea.sflag [#allocation7], %s2423_s10 }
 0x2fe   : > { %s1950_s12 = scalar_lea.vmem %s2737_s23, 4096  ;;  %p2891_p7 = scmp.ne.s32.totalorder %s2861_s28, 0 }
 0x2ff   : > { %p1951_p6 = scmp.ne.s32.totalorder %s2737_s23, %s1950_s12  ;;  %s2115_s16 = smov [#allocation11]  }
 0x300   : > { %s1954_s15 = sshll.u32 %s2115_s16, 4  ;;  %s1955_s15 = int_to_ptr.vmem [resolvable:$false] %s1954_s15 }
 0x301   : > { %p1952_p12 = pnand %p1951_p6, %p2891_p7  ;;  %s1956_s2 = scalar_lea.vmem %s1955_s15, 8192 }
 0x302   : > { %s1477_s19 = sshll.u32 %s2888_s13, 12  ;;  %p1957_p8 = scmp.lt.s32.totalorder %s2737_s23, %s1955_s15 }
 0x303   : > { %s2890_s17 = smov %s2889_s20  ;;  %s2734_s3 = scalar_lea.hbm %s2889_s20, %s1477_s19 }
 0x304   : > { %p1953_p2 = pneg %p1952_p12  ;;  %p1958_p9 = scmp.lt.s32.totalorder %s1956_s2, %s1950_s12 }
 0x306   : > { %p1959_p0 = por %p1958_p9, %p1957_p8 }
 0x308   : > { %p1960_p10 = pnand %p1959_p0, %p1953_p2 }
 0x30a   : > { %1963 = shalt.err (!%p1960_p10)
}
 0x30b   : > { %s1964_s8 = scalar_lea.hbm %s2734_s3, 4096  ;;  %s1968_s5 = scalar_lea.hbm %s2890_s17, 8192 }
 0x30c   : > { %p1965_p3 = scmp.ne.s32.totalorder %s2734_s3, %s1964_s8  ;;  %p1969_p13 = scmp.lt.s32.totalorder %s2734_s3, %s2890_s17 }
 0x30d   : > { %p1970_p5 = scmp.lt.s32.totalorder %s1968_s5, %s1964_s8 }
 0x30e   : > { %p1966_p11 = pnand %p1965_p3, %p2891_p7 }
 0x30f   : > { %p1971_p4 = por %p1970_p5, %p1969_p13 }
 0x310   : > { %p1967_p1 = pneg %p1966_p11 }
 0x312   : > { %p1972_p6 = pnand %p1971_p4, %p1967_p1 }
 0x314   : > { %1975 = shalt.err (!%p1972_p6)
}
 0x315   : > { %s2116_s19 = smov 128   ;;  %s2117_s14 = smov 8  }
 0x316   : > { %1632 = dma.vmem_to_hbm [thread:$0]  (%p2891_p7), %s2737_s23, 4096, %s2734_s3, %s1283_s18, %s2116_s19, %s2116_s19, %s2117_s14  }
 0x317 PF: > { %p1653_p12 = scmp.ge.s32.totalorder %s2104_s6, 2  ;;  %s1311_s29 = sand.u32 1, %s2076_s25  }
 0x318   : > { %p2892_p2 = scmp.ne.s32.totalorder %s2862_s11, 0  ;;  %s1312_s20 = scalar_lea.sflag [#allocation7], %s1311_s29 }
 0x31a   : > { %p1649_p8 = pnand %p1653_p12, %p2892_p2 }
 0x31c   : > { %p1650_p9 = pneg %p1649_p8 }
 0x31e   : > { %2047 = dma.done.wait (%p1650_p9), %s1312_s20, 4096  }
 0x31f   : > { %2049 = vsyncadd (%p1650_p9), %s1312_s20, 4294963200  ;;  %s29_s6 = sadd.s32 1, %s2104_s6   ;;  %s2894_s28 = sld [smem:[#allocation22_spill]] }
 0x320   : > { %p2767_p0 = scmp.ge.s32.totalorder %s29_s6, 6   ;;  %s2895_s22 = sld [smem:[#allocation23_spill]] }
 0x321   : > { %s2896_s10 = smov %s2266_s0  ;;  %s2897_s11 = sld [smem:[#allocation30_spill]] }
 0x322   : > { %s2898_s29 = sld [smem:[#allocation26_spill]]  ;;  %s2902_s20 = smov %s2060_s21 }
 0x323   : > { %s2899_s3 = sld [smem:[#allocation27_spill]]  ;;  %s2903_s21 = smov %s2364_s9 }
 0x324   : > { %s2900_s5 = sld [smem:[#allocation28_spill]]  ;;  %s2904_s23 = smov %s2072_s24 }
 0x325   : > { %s2901_s0 = smov %s2894_s28  ;;  %s2905_s24 = smov %s2896_s10 }
 0x326   : > { %s2906_s25 = smov %s2080_s26  ;;  %s2907_s26 = smov %s2084_s27 }
 0x327   : > { %s2908_s27 = smov %s2897_s11  ;;  %s2909_s28 = smov %s2096_s30 }
 0x328   :  { %28 = sbr.rel (!%p2767_p0) target bundleno = 29 (0x1d), region = 109 }
 0x329   : > { %s2910_s30 = smov %s2899_s3 }
 0x32d   :  { %1317 = vsyncpa [#allocation6], 1 }
 0x32e   :  { %1319 = vsyncpa [#allocation6 + $0x1], 1 }
 0x32f   :  { %1320 = vsyncpa [#allocation9], 1 }
 0x330   :  { %1322 = vsyncpa [#allocation9 + $0x1], 1 }
 0x331   :  { %1323 = vsyncpa [#allocation7], 1 }
 0x332   :  { %1325 = vsyncpa [#allocation7 + $0x1], 1 }

</bundles_post_ra>
